<compile_context>
chip_gen: v7x
topology: tpu7x:2x2x1
jax: 0.10.0
libtpu: 0.0.40
codegen_flags: <defaults>
</compile_context>

<pallas_src>
import functools
import math

import jax
import jax.numpy as jnp
from jax import lax
from jax.experimental import pallas as pl
from jax.experimental.pallas import tpu as pltpu


def _layer_norm(x, g, b, eps=1e-5):
    # f32 statistics; rsqrt goes to the EUP slot.
    mean = jnp.mean(x, axis=-1, keepdims=True)
    var = jnp.mean(jnp.square(x - mean), axis=-1, keepdims=True)
    return (x - mean) * lax.rsqrt(var + eps) * g + b


def _decoder_layer_kernel(num_heads, use_einshape,
                          x_ref, enc_ref, gate_ref, amask_ref, emask_ref,
                          causal_ref,
                          w_sa_ref, b_sa_ref, w_ca_ref, b_ca_ref,
                          ln_g_ref, ln_b_ref, w1_ref, b1_ref, w2_ref, b2_ref,
                          out_ref):
    Bblk, S, D = x_ref.shape
    Se = enc_ref.shape[1]
    H = num_heads
    Dh = D // H
    R = Bblk * S
    bf16 = jnp.bfloat16

    # Residual / LayerNorm stream stays f32 (parity with the f32 reference);
    # bf16 is used only for MXU operands.
    x = x_ref[...].reshape(R, D)
    enc_bf = enc_ref[...].reshape(Bblk * Se, D)
    gate = gate_ref[...].reshape(R, 1)

    # Attend-masks: the causal mask is a precomputed constant input; key
    # padding comes from the per-batch mask rows.  Built once per grid step.
    causal = causal_ref[...] > 0.5                                    # (S, S)
    allow_self = jnp.logical_and(causal[None], amask_ref[...] > 0.5)  # (Bblk,S,S)
    allow_cross = emask_ref[...] > 0.5                                # (Bblk,1,Se)

    ln_g = ln_g_ref[...]
    ln_b = ln_b_ref[...]

    def split_heads(t, sk):
        """(Bblk*sk, H*Dh) bf16 -> (Bblk*H, sk, Dh) bf16."""
        if use_einshape:
            return pltpu.einshape("(bs)(hd)->(bh)sd", t, b=Bblk, h=H)
        # Fallback: lane slices + concat (known-good Mosaic path, slower).
        parts = []
        for bi in range(Bblk):
            rows = t[bi * sk:(bi + 1) * sk]
            parts.extend(rows[:, hh * Dh:(hh + 1) * Dh][None] for hh in range(H))
        return jnp.concatenate(parts, axis=0)

    def merge_heads(c):
        """(Bblk*H, S, Dh) bf16 -> (Bblk*S, H*Dh) bf16."""
        if use_einshape:
            return pltpu.einshape("(bh)sd->(bs)(hd)", c, b=Bblk, h=H)
        rows = []
        for bi in range(Bblk):
            rows.append(jnp.concatenate([c[bi * H + hh] for hh in range(H)],
                                        axis=-1))
        return jnp.concatenate(rows, axis=0)

    def mha(q_src_bf, kv_src_bf, sk, W, b, allow4):
        # Full-width projections (contraction K = D keeps the MXU fed).
        q = jnp.dot(q_src_bf, W[0], preferred_element_type=jnp.float32) + b[0]
        k = jnp.dot(kv_src_bf, W[1], preferred_element_type=jnp.float32) + b[1]
        v = jnp.dot(kv_src_bf, W[2], preferred_element_type=jnp.float32) + b[2]
        # Fold 1/sqrt(Dh) into q once instead of scaling the score tensor.
        q = q * jnp.float32(1.0 / math.sqrt(Dh))

        q3 = split_heads(q.astype(bf16), S)      # (Bblk*H, S,  Dh)
        k3 = split_heads(k.astype(bf16), sk)     # (Bblk*H, sk, Dh)
        v3 = split_heads(v.astype(bf16), sk)

        # Scores: one contraction batched over (Bblk*H), f32 accumulation.
        s = jnp.einsum("gqd,gkd->gqk", q3, k3,
                       preferred_element_type=jnp.float32)
        s = jnp.where(allow4, s.reshape(Bblk, H, S, sk), jnp.float32(-1e9))

        # Softmax; EUP reciprocal (~1e-3 rel err — fine for inference, swap for
        # an exact divide if bit-tight parity against f32 softmax is needed).
        m = jnp.max(s, axis=-1, keepdims=True)
        e = jnp.exp(s - m)
        p = e * pl.reciprocal(jnp.sum(e, axis=-1, keepdims=True), approx=True)

        ctx = jnp.einsum("gqk,gkd->gqd",
                         p.reshape(Bblk * H, S, sk).astype(bf16), v3,
                         preferred_element_type=jnp.float32)
        ctx = merge_heads(ctx.astype(bf16))      # (R, D) bf16
        return jnp.dot(ctx, W[3], preferred_element_type=jnp.float32) + b[3]

    # ---- self attention (causal + key padding) + gate + residual + LN1 ----
    x_bf = x.astype(bf16)
    y = mha(x_bf, x_bf, S, w_sa_ref[...], b_sa_ref[...], allow_self[:, None])
    x = _layer_norm(x + y * gate, ln_g[0], ln_b[0])

    # ---- cross attention over encoder output + gate + residual + LN2 ----
    y = mha(x.astype(bf16), enc_bf, Se, w_ca_ref[...], b_ca_ref[...],
            allow_cross[:, None])
    x = _layer_norm(x + y * gate, ln_g[1], ln_b[1])

    # ---- position-wise feed forward + gate + residual + LN3 ----
    # TODO(synk): tile over F (stream W1/W2 slices, accumulate) for prod F.
    h = jnp.dot(x.astype(bf16), w1_ref[...],
                preferred_element_type=jnp.float32) + b1_ref[...]
    h = jnp.maximum(h, 0.0)
    y = jnp.dot(h.astype(bf16), w2_ref[...],
                preferred_element_type=jnp.float32) + b2_ref[...]
    x = _layer_norm(x + y * gate, ln_g[2], ln_b[2])

    # Final per-query gating as in the reference module.  Output stays f32 to
    # match the f32 PyTorch layer (emit bf16 here if the consumer allows it —
    # halves the vst / HBM writeback; demo D=32 is lane-sparse anyway).
    out_ref[...] = (x * gate).reshape(Bblk, S, D).astype(out_ref.dtype)


def _pick_batch_block(B, S, target_rows=256):
    """Largest divisor of B such that Bblk*S stays near the MXU row target."""
    best = 1
    for cand in range(1, B + 1):
        if B % cand == 0 and cand * S <= max(target_rows, S):
            best = cand
    return best


def _vmem_limit_bytes(Bblk, S, Se, D, F, H, multibuffer_weights):
    """VMEM budget: single-buffered resident weights (unless fallback path),
    double-buffered per-step I/O, in-kernel temporaries, 2x headroom, capped
    by the chip's actual VMEM capacity minus margin."""
    bf2, f4 = 2, 4
    R, Re, G = Bblk * S, Bblk * Se, Bblk * H
    wfac = 2 if multibuffer_weights else 1
    weights = wfac * ((8 * D * D + 2 * D * F) * bf2
                      + (8 * D + 6 * D + F + D) * f4 + S * S * f4)
    io = 2 * ((R * D) * f4            # x in (f32)
              + (Re * D) * bf2        # encoder in (bf16)
              + (2 * R + Re) * f4     # gate + key-padding rows
              + (R * D) * f4)         # out (f32)
    temps = ((10 * R * D) * f4                     # q/k/v, residual, ln temps
             + (R * D + 2 * Re * D) * bf2          # head views
             + 3 * G * S * max(S, Se) * f4         # scores / exp / probs
             + 2 * R * F * f4)                     # FFN hidden
    need = weights + io + temps
    try:
        cap = int(pltpu.get_tpu_info().vmem_capacity_bytes) - (8 << 20)
    except Exception:
        cap = 56 << 20                              # conservative (v7x-safe)
    cap = max(cap, 32 << 20)
    return int(min(max(2 * need, 32 << 20), cap))


def _build_call(B, S, Se, D, F, H, Bblk, fast):
    def batched(shape):
        n = len(shape)
        return pl.BlockSpec((Bblk,) + shape, lambda b, _n=n: (b,) + (0,) * _n)

    def const(shape):
        n = len(shape)
        idx = lambda b, _n=n: (0,) * _n
        if fast:
            # Block index never changes across the grid: single-buffer to halve
            # resident weight VMEM (critical on v7x's 64 MiB part).
            return pl.BlockSpec(shape, idx, pipeline_mode=pl.Buffered(1))
        return pl.BlockSpec(shape, idx)

    kernel = functools.partial(_decoder_layer_kernel, H, fast)

    grid_spec = pltpu.PrefetchScalarGridSpec(
        num_scalar_prefetch=0,
        grid=(B // Bblk,),
        in_specs=[
            batched((S, D)),      # x (f32)
            batched((Se, D)),     # encoder (bf16)
            batched((S, 1)),      # attention mask, per-query gate form
            batched((1, S)),      # attention mask, key-row form
            batched((1, Se)),     # encoder mask, key-row form
            const((S, S)),        # causal mask (constant)
            const((4, D, D)),     # self-attn  [Wq,Wk,Wv,Wo] (bf16)
            const((4, D)),        # self-attn biases (f32)
            const((4, D, D)),     # cross-attn weights (bf16)
            const((4, D)),        # cross-attn biases (f32)
            const((3, D)),        # LayerNorm gammas
            const((3, D)),        # LayerNorm betas
            const((D, F)),        # FFN linear1 weight (bf16)
            const((1, F)),        # FFN linear1 bias
            const((F, D)),        # FFN linear2 weight (bf16)
            const((1, D)),        # FFN linear2 bias
        ],
        out_specs=batched((S, D)),
    )

    flops = 2 * B * (4 * S * D * D + 2 * S * S * D
                     + 2 * S * D * D + 2 * Se * D * D + 2 * S * Se * D
                     + 2 * S * D * F)
    transcendentals = B * (H * S * (S + Se) + 5 * S)
    bytes_accessed = (B * S * D * 4 + B * Se * D * 2 + B * S * D * 4
                      + B * (2 * S + Se) * 4 + S * S * 4
                      + (8 * D * D + 2 * D * F) * 2 + (15 * D + F) * 4)

    return pl.pallas_call(
        kernel,
        out_shape=jax.ShapeDtypeStruct((B, S, D), jnp.float32),
        grid_spec=grid_spec,
        compiler_params=pltpu.CompilerParams(
            dimension_semantics=("parallel",),
            vmem_limit_bytes=_vmem_limit_bytes(Bblk, S, Se, D, F, H,
                                               multibuffer_weights=not fast)),
        cost_estimate=pl.CostEstimate(flops=flops,
                                      transcendentals=transcendentals,
                                      bytes_accessed=bytes_accessed),
    )


def transformer_decoder_layer(x, encoder, encoder_attention_mask,
                              attention_mask, params, num_heads):
    B, S, D = x.shape
    Se = encoder.shape[1]
    F = params["w1"].shape[1]
    Bblk = _pick_batch_block(B, S)

    amask = attention_mask.astype(jnp.float32)
    emask = encoder_attention_mask.astype(jnp.float32)
    gate = amask.reshape(B, S, 1)
    amask_row = amask.reshape(B, 1, S)
    emask_row = emask.reshape(B, 1, Se)
    causal = jnp.tril(jnp.ones((S, S), jnp.float32))

    bf16 = jnp.bfloat16
    args = (x.astype(jnp.float32), encoder.astype(bf16),
            gate, amask_row, emask_row, causal,
            params["w_sa"].astype(bf16), params["b_sa"].astype(jnp.float32),
            params["w_ca"].astype(bf16), params["b_ca"].astype(jnp.float32),
            params["ln_g"].astype(jnp.float32), params["ln_b"].astype(jnp.float32),
            params["w1"].astype(bf16), params["b1"].astype(jnp.float32),
            params["w2"].astype(bf16), params["b2"].astype(jnp.float32))

    try:
        out = _build_call(B, S, Se, D, F, num_heads, Bblk, fast=True)(*args)
        jax.block_until_ready(out)
        return out
    except Exception:
        # TODO(synk): einshape / Buffered(1) unavailable on this jax build;
        # fall back to lane-slice head split + default double-buffered weights.
        return _build_call(B, S, Se, D, F, num_heads, Bblk, fast=False)(*args)


if __name__ == "__main__":
    B, S, Se, D, H, F = 2, 8, 8, 32, 4, 64

    key = jax.random.PRNGKey(0)
    ks = jax.random.split(key, 8)

    def init(k, shape):
        return jax.random.normal(k, shape, jnp.float32) * 0.02

    params = dict(
        w_sa=init(ks[0], (4, D, D)),
        b_sa=jnp.zeros((4, D), jnp.float32),
        w_ca=init(ks[1], (4, D, D)),
        b_ca=jnp.zeros((4, D), jnp.float32),
        ln_g=jnp.ones((3, D), jnp.float32),
        ln_b=jnp.zeros((3, D), jnp.float32),
        w1=init(ks[2], (D, F)),
        b1=jnp.zeros((1, F), jnp.float32),
        w2=init(ks[3], (F, D)),
        b2=jnp.zeros((1, D), jnp.float32),
    )

    x = jax.random.normal(ks[4], (B, S, D), jnp.float32)
    encoder_out = jax.random.normal(ks[5], (B, Se, D), jnp.float32)
    attention_mask = jnp.array(
        [[1, 1, 1, 1, 1, 1, 0, 0],
         [1, 1, 1, 1, 1, 1, 1, 1]], jnp.float32)
    encoder_attention_mask = jnp.array(
        [[1, 1, 1, 1, 1, 1, 1, 0],
         [1, 1, 1, 1, 1, 1, 1, 1]], jnp.float32)

    out = transformer_decoder_layer(
        x, encoder_out, encoder_attention_mask, attention_mask, params, H)
    jax.block_until_ready(out)
    assert out.shape == (B, S, D)
    print("KERNEL_OK")
</pallas_src>

<mosaic_0001>
module attributes {stable_mosaic.version = 11 : i64} {
  func.func @_decoder_layer_kernel(%arg0: i32, %arg1: memref<2x8x32xf32, #tpu.memory_space<vmem>>, %arg2: memref<2x8x32xbf16, #tpu.memory_space<vmem>>, %arg3: memref<2x8x1xf32, #tpu.memory_space<vmem>>, %arg4: memref<2x1x8xf32, #tpu.memory_space<vmem>>, %arg5: memref<2x1x8xf32, #tpu.memory_space<vmem>>, %arg6: memref<8x8xf32, #tpu.memory_space<vmem>>, %arg7: memref<4x32x32xbf16, #tpu.memory_space<vmem>>, %arg8: memref<4x32xf32, #tpu.memory_space<vmem>>, %arg9: memref<4x32x32xbf16, #tpu.memory_space<vmem>>, %arg10: memref<4x32xf32, #tpu.memory_space<vmem>>, %arg11: memref<3x32xf32, #tpu.memory_space<vmem>>, %arg12: memref<3x32xf32, #tpu.memory_space<vmem>>, %arg13: memref<32x64xbf16, #tpu.memory_space<vmem>>, %arg14: memref<1x64xf32, #tpu.memory_space<vmem>>, %arg15: memref<64x32xbf16, #tpu.memory_space<vmem>>, %arg16: memref<1x32xf32, #tpu.memory_space<vmem>>, %arg17: memref<2x8x32xf32, #tpu.memory_space<vmem>>) attributes {dimension_semantics = [#tpu.dimension_semantics<parallel>], iteration_bounds = array<i64: 1>, scalar_prefetch = 0 : i64, scratch_operands = 0 : i64, tpu.core_type = #tpu.core_type<tc>, window_params = [{transform_indices = @transform_0, window_bounds = array<i64: 2, 8, 32>}, {transform_indices = @transform_1, window_bounds = array<i64: 2, 8, 32>}, {transform_indices = @transform_2, window_bounds = array<i64: 2, 8, 1>}, {transform_indices = @transform_3, window_bounds = array<i64: 2, 1, 8>}, {transform_indices = @transform_4, window_bounds = array<i64: 2, 1, 8>}, {pipeline_mode = #tpu.pipeline_mode<synchronous>, transform_indices = @transform_5, window_bounds = array<i64: 8, 8>}, {pipeline_mode = #tpu.pipeline_mode<synchronous>, transform_indices = @transform_6, window_bounds = array<i64: 4, 32, 32>}, {pipeline_mode = #tpu.pipeline_mode<synchronous>, transform_indices = @transform_7, window_bounds = array<i64: 4, 32>}, {pipeline_mode = #tpu.pipeline_mode<synchronous>, transform_indices = @transform_8, window_bounds = array<i64: 4, 32, 32>}, {pipeline_mode = #tpu.pipeline_mode<synchronous>, transform_indices = @transform_9, window_bounds = array<i64: 4, 32>}, {pipeline_mode = #tpu.pipeline_mode<synchronous>, transform_indices = @transform_10, window_bounds = array<i64: 3, 32>}, {pipeline_mode = #tpu.pipeline_mode<synchronous>, transform_indices = @transform_11, window_bounds = array<i64: 3, 32>}, {pipeline_mode = #tpu.pipeline_mode<synchronous>, transform_indices = @transform_12, window_bounds = array<i64: 32, 64>}, {pipeline_mode = #tpu.pipeline_mode<synchronous>, transform_indices = @transform_13, window_bounds = array<i64: 1, 64>}, {pipeline_mode = #tpu.pipeline_mode<synchronous>, transform_indices = @transform_14, window_bounds = array<i64: 64, 32>}, {pipeline_mode = #tpu.pipeline_mode<synchronous>, transform_indices = @transform_15, window_bounds = array<i64: 1, 32>}, {transform_indices = @transform_16, window_bounds = array<i64: 2, 8, 32>}]} {
    %c0 = arith.constant 0 : index
    %c0_0 = arith.constant 0 : index
    %c0_1 = arith.constant 0 : index
    %0 = vector.load %arg1[%c0, %c0_0, %c0_1] : memref<2x8x32xf32, #tpu.memory_space<vmem>>, vector<2x8x32xf32>
    %1 = vector.shape_cast %0 : vector<2x8x32xf32> to vector<16x32xf32>
    %c0_2 = arith.constant 0 : index
    %c0_3 = arith.constant 0 : index
    %c0_4 = arith.constant 0 : index
    %2 = vector.load %arg2[%c0_2, %c0_3, %c0_4] : memref<2x8x32xbf16, #tpu.memory_space<vmem>>, vector<2x8x32xbf16>
    %3 = vector.shape_cast %2 : vector<2x8x32xbf16> to vector<16x32xbf16>
    %c0_5 = arith.constant 0 : index
    %c0_6 = arith.constant 0 : index
    %c0_7 = arith.constant 0 : index
    %4 = vector.load %arg3[%c0_5, %c0_6, %c0_7] : memref<2x8x1xf32, #tpu.memory_space<vmem>>, vector<2x8x1xf32>
    %5 = vector.shape_cast %4 : vector<2x8x1xf32> to vector<16x1xf32>
    %c0_8 = arith.constant 0 : index
    %c0_9 = arith.constant 0 : index
    %6 = vector.load %arg6[%c0_8, %c0_9] : memref<8x8xf32, #tpu.memory_space<vmem>>, vector<8x8xf32>
    %cst = arith.constant 5.000000e-01 : f32
    %7 = vector.broadcast %cst : f32 to vector<8x8xf32>
    %8 = arith.cmpf ogt, %6, %7 : vector<8x8xf32>
    %9 = vector.shape_cast %8 : vector<8x8xi1> to vector<1x8x8xi1>
    %c0_10 = arith.constant 0 : index
    %c0_11 = arith.constant 0 : index
    %c0_12 = arith.constant 0 : index
    %10 = vector.load %arg4[%c0_10, %c0_11, %c0_12] : memref<2x1x8xf32, #tpu.memory_space<vmem>>, vector<2x1x8xf32>
    %cst_13 = arith.constant 5.000000e-01 : f32
    %11 = vector.broadcast %cst_13 : f32 to vector<2x1x8xf32>
    %12 = arith.cmpf ogt, %10, %11 : vector<2x1x8xf32>
    %13 = vector.broadcast %9 : vector<1x8x8xi1> to vector<2x8x8xi1>
    %14 = vector.broadcast %12 : vector<2x1x8xi1> to vector<2x8x8xi1>
    %15 = arith.andi %13, %14 : vector<2x8x8xi1>
    %c0_14 = arith.constant 0 : index
    %c0_15 = arith.constant 0 : index
    %c0_16 = arith.constant 0 : index
    %16 = vector.load %arg5[%c0_14, %c0_15, %c0_16] : memref<2x1x8xf32, #tpu.memory_space<vmem>>, vector<2x1x8xf32>
    %cst_17 = arith.constant 5.000000e-01 : f32
    %17 = vector.broadcast %cst_17 : f32 to vector<2x1x8xf32>
    %18 = arith.cmpf ogt, %16, %17 : vector<2x1x8xf32>
    %c0_18 = arith.constant 0 : index
    %c0_19 = arith.constant 0 : index
    %19 = vector.load %arg11[%c0_18, %c0_19] : memref<3x32xf32, #tpu.memory_space<vmem>>, vector<3x32xf32>
    %c0_20 = arith.constant 0 : index
    %c0_21 = arith.constant 0 : index
    %20 = vector.load %arg12[%c0_20, %c0_21] : memref<3x32xf32, #tpu.memory_space<vmem>>, vector<3x32xf32>
    %21 = arith.truncf %1 : vector<16x32xf32> to vector<16x32xbf16>
    %c0_22 = arith.constant 0 : index
    %c0_23 = arith.constant 0 : index
    %c0_24 = arith.constant 0 : index
    %22 = vector.load %arg7[%c0_22, %c0_23, %c0_24] : memref<4x32x32xbf16, #tpu.memory_space<vmem>>, vector<4x32x32xbf16>
    %c0_25 = arith.constant 0 : index
    %c0_26 = arith.constant 0 : index
    %23 = vector.load %arg8[%c0_25, %c0_26] : memref<4x32xf32, #tpu.memory_space<vmem>>, vector<4x32xf32>
    %24 = vector.shape_cast %15 : vector<2x8x8xi1> to vector<2x1x8x8xi1>
    %25 = vector.extract_strided_slice %22 {offsets = [0, 0, 0], sizes = [1, 32, 32], strides = [1, 1, 1]} : vector<4x32x32xbf16> to vector<1x32x32xbf16>
    %26 = vector.shape_cast %25 : vector<1x32x32xbf16> to vector<32x32xbf16>
    %cst_27 = arith.constant dense<0.000000e+00> : vector<16x32xf32>
    %27 = tpu.matmul %21, %26, %cst_27 {dimension_numbers = #tpu.dot_dimension_numbers<[1], [0], [0], [1], [0, 0, 1, 1], [], []>} : vector<16x32xbf16>, vector<32x32xbf16>, vector<16x32xf32> -> vector<16x32xf32>
    %28 = vector.extract_strided_slice %23 {offsets = [0, 0], sizes = [1, 32], strides = [1, 1]} : vector<4x32xf32> to vector<1x32xf32>
    %29 = vector.shape_cast %28 : vector<1x32xf32> to vector<32xf32>
    %30 = vector.shape_cast %29 : vector<32xf32> to vector<1x32xf32>
    %31 = vector.broadcast %30 : vector<1x32xf32> to vector<16x32xf32>
    %32 = arith.addf %27, %31 : vector<16x32xf32>
    %33 = vector.extract_strided_slice %22 {offsets = [1, 0, 0], sizes = [1, 32, 32], strides = [1, 1, 1]} : vector<4x32x32xbf16> to vector<1x32x32xbf16>
    %34 = vector.shape_cast %33 : vector<1x32x32xbf16> to vector<32x32xbf16>
    %cst_28 = arith.constant dense<0.000000e+00> : vector<16x32xf32>
    %35 = tpu.matmul %21, %34, %cst_28 {dimension_numbers = #tpu.dot_dimension_numbers<[1], [0], [0], [1], [0, 0, 1, 1], [], []>} : vector<16x32xbf16>, vector<32x32xbf16>, vector<16x32xf32> -> vector<16x32xf32>
    %36 = vector.extract_strided_slice %23 {offsets = [1, 0], sizes = [1, 32], strides = [1, 1]} : vector<4x32xf32> to vector<1x32xf32>
    %37 = vector.shape_cast %36 : vector<1x32xf32> to vector<32xf32>
    %38 = vector.shape_cast %37 : vector<32xf32> to vector<1x32xf32>
    %39 = vector.broadcast %38 : vector<1x32xf32> to vector<16x32xf32>
    %40 = arith.addf %35, %39 : vector<16x32xf32>
    %41 = vector.extract_strided_slice %22 {offsets = [2, 0, 0], sizes = [1, 32, 32], strides = [1, 1, 1]} : vector<4x32x32xbf16> to vector<1x32x32xbf16>
    %42 = vector.shape_cast %41 : vector<1x32x32xbf16> to vector<32x32xbf16>
    %cst_29 = arith.constant dense<0.000000e+00> : vector<16x32xf32>
    %43 = tpu.matmul %21, %42, %cst_29 {dimension_numbers = #tpu.dot_dimension_numbers<[1], [0], [0], [1], [0, 0, 1, 1], [], []>} : vector<16x32xbf16>, vector<32x32xbf16>, vector<16x32xf32> -> vector<16x32xf32>
    %44 = vector.extract_strided_slice %23 {offsets = [2, 0], sizes = [1, 32], strides = [1, 1]} : vector<4x32xf32> to vector<1x32xf32>
    %45 = vector.shape_cast %44 : vector<1x32xf32> to vector<32xf32>
    %46 = vector.shape_cast %45 : vector<32xf32> to vector<1x32xf32>
    %47 = vector.broadcast %46 : vector<1x32xf32> to vector<16x32xf32>
    %48 = arith.addf %43, %47 : vector<16x32xf32>
    %cst_30 = arith.constant 0.353553385 : f32
    %49 = vector.broadcast %cst_30 : f32 to vector<16x32xf32>
    %50 = arith.mulf %32, %49 : vector<16x32xf32>
    %51 = arith.truncf %50 : vector<16x32xf32> to vector<16x32xbf16>
    %52 = vector.extract_strided_slice %51 {offsets = [0, 0], sizes = [8, 32], strides = [1, 1]} : vector<16x32xbf16> to vector<8x32xbf16>
    %53 = vector.extract_strided_slice %52 {offsets = [0, 0], sizes = [8, 8], strides = [1, 1]} : vector<8x32xbf16> to vector<8x8xbf16>
    %54 = vector.shape_cast %53 : vector<8x8xbf16> to vector<1x8x8xbf16>
    %55 = vector.extract_strided_slice %52 {offsets = [0, 8], sizes = [8, 8], strides = [1, 1]} : vector<8x32xbf16> to vector<8x8xbf16>
    %56 = vector.shape_cast %55 : vector<8x8xbf16> to vector<1x8x8xbf16>
    %57 = vector.extract_strided_slice %52 {offsets = [0, 16], sizes = [8, 8], strides = [1, 1]} : vector<8x32xbf16> to vector<8x8xbf16>
    %58 = vector.shape_cast %57 : vector<8x8xbf16> to vector<1x8x8xbf16>
    %59 = vector.extract_strided_slice %52 {offsets = [0, 24], sizes = [8, 8], strides = [1, 1]} : vector<8x32xbf16> to vector<8x8xbf16>
    %60 = vector.shape_cast %59 : vector<8x8xbf16> to vector<1x8x8xbf16>
    %61 = vector.extract_strided_slice %51 {offsets = [8, 0], sizes = [8, 32], strides = [1, 1]} : vector<16x32xbf16> to vector<8x32xbf16>
    %62 = vector.extract_strided_slice %61 {offsets = [0, 0], sizes = [8, 8], strides = [1, 1]} : vector<8x32xbf16> to vector<8x8xbf16>
    %63 = vector.shape_cast %62 : vector<8x8xbf16> to vector<1x8x8xbf16>
    %64 = vector.extract_strided_slice %61 {offsets = [0, 8], sizes = [8, 8], strides = [1, 1]} : vector<8x32xbf16> to vector<8x8xbf16>
    %65 = vector.shape_cast %64 : vector<8x8xbf16> to vector<1x8x8xbf16>
    %66 = vector.extract_strided_slice %61 {offsets = [0, 16], sizes = [8, 8], strides = [1, 1]} : vector<8x32xbf16> to vector<8x8xbf16>
    %67 = vector.shape_cast %66 : vector<8x8xbf16> to vector<1x8x8xbf16>
    %68 = vector.extract_strided_slice %61 {offsets = [0, 24], sizes = [8, 8], strides = [1, 1]} : vector<8x32xbf16> to vector<8x8xbf16>
    %69 = vector.shape_cast %68 : vector<8x8xbf16> to vector<1x8x8xbf16>
    %70 = tpu.concatenate %54, %56, %58, %60, %63, %65, %67, %69 in 0 : vector<1x8x8xbf16>, vector<1x8x8xbf16>, vector<1x8x8xbf16>, vector<1x8x8xbf16>, vector<1x8x8xbf16>, vector<1x8x8xbf16>, vector<1x8x8xbf16>, vector<1x8x8xbf16> -> vector<8x8x8xbf16>
    %71 = arith.truncf %40 : vector<16x32xf32> to vector<16x32xbf16>
    %72 = vector.extract_strided_slice %71 {offsets = [0, 0], sizes = [8, 32], strides = [1, 1]} : vector<16x32xbf16> to vector<8x32xbf16>
    %73 = vector.extract_strided_slice %72 {offsets = [0, 0], sizes = [8, 8], strides = [1, 1]} : vector<8x32xbf16> to vector<8x8xbf16>
    %74 = vector.shape_cast %73 : vector<8x8xbf16> to vector<1x8x8xbf16>
    %75 = vector.extract_strided_slice %72 {offsets = [0, 8], sizes = [8, 8], strides = [1, 1]} : vector<8x32xbf16> to vector<8x8xbf16>
    %76 = vector.shape_cast %75 : vector<8x8xbf16> to vector<1x8x8xbf16>
    %77 = vector.extract_strided_slice %72 {offsets = [0, 16], sizes = [8, 8], strides = [1, 1]} : vector<8x32xbf16> to vector<8x8xbf16>
    %78 = vector.shape_cast %77 : vector<8x8xbf16> to vector<1x8x8xbf16>
    %79 = vector.extract_strided_slice %72 {offsets = [0, 24], sizes = [8, 8], strides = [1, 1]} : vector<8x32xbf16> to vector<8x8xbf16>
    %80 = vector.shape_cast %79 : vector<8x8xbf16> to vector<1x8x8xbf16>
    %81 = vector.extract_strided_slice %71 {offsets = [8, 0], sizes = [8, 32], strides = [1, 1]} : vector<16x32xbf16> to vector<8x32xbf16>
    %82 = vector.extract_strided_slice %81 {offsets = [0, 0], sizes = [8, 8], strides = [1, 1]} : vector<8x32xbf16> to vector<8x8xbf16>
    %83 = vector.shape_cast %82 : vector<8x8xbf16> to vector<1x8x8xbf16>
    %84 = vector.extract_strided_slice %81 {offsets = [0, 8], sizes = [8, 8], strides = [1, 1]} : vector<8x32xbf16> to vector<8x8xbf16>
    %85 = vector.shape_cast %84 : vector<8x8xbf16> to vector<1x8x8xbf16>
    %86 = vector.extract_strided_slice %81 {offsets = [0, 16], sizes = [8, 8], strides = [1, 1]} : vector<8x32xbf16> to vector<8x8xbf16>
    %87 = vector.shape_cast %86 : vector<8x8xbf16> to vector<1x8x8xbf16>
    %88 = vector.extract_strided_slice %81 {offsets = [0, 24], sizes = [8, 8], strides = [1, 1]} : vector<8x32xbf16> to vector<8x8xbf16>
    %89 = vector.shape_cast %88 : vector<8x8xbf16> to vector<1x8x8xbf16>
    %90 = tpu.concatenate %74, %76, %78, %80, %83, %85, %87, %89 in 0 : vector<1x8x8xbf16>, vector<1x8x8xbf16>, vector<1x8x8xbf16>, vector<1x8x8xbf16>, vector<1x8x8xbf16>, vector<1x8x8xbf16>, vector<1x8x8xbf16>, vector<1x8x8xbf16> -> vector<8x8x8xbf16>
    %91 = arith.truncf %48 : vector<16x32xf32> to vector<16x32xbf16>
    %92 = vector.extract_strided_slice %91 {offsets = [0, 0], sizes = [8, 32], strides = [1, 1]} : vector<16x32xbf16> to vector<8x32xbf16>
    %93 = vector.extract_strided_slice %92 {offsets = [0, 0], sizes = [8, 8], strides = [1, 1]} : vector<8x32xbf16> to vector<8x8xbf16>
    %94 = vector.shape_cast %93 : vector<8x8xbf16> to vector<1x8x8xbf16>
    %95 = vector.extract_strided_slice %92 {offsets = [0, 8], sizes = [8, 8], strides = [1, 1]} : vector<8x32xbf16> to vector<8x8xbf16>
    %96 = vector.shape_cast %95 : vector<8x8xbf16> to vector<1x8x8xbf16>
    %97 = vector.extract_strided_slice %92 {offsets = [0, 16], sizes = [8, 8], strides = [1, 1]} : vector<8x32xbf16> to vector<8x8xbf16>
    %98 = vector.shape_cast %97 : vector<8x8xbf16> to vector<1x8x8xbf16>
    %99 = vector.extract_strided_slice %92 {offsets = [0, 24], sizes = [8, 8], strides = [1, 1]} : vector<8x32xbf16> to vector<8x8xbf16>
    %100 = vector.shape_cast %99 : vector<8x8xbf16> to vector<1x8x8xbf16>
    %101 = vector.extract_strided_slice %91 {offsets = [8, 0], sizes = [8, 32], strides = [1, 1]} : vector<16x32xbf16> to vector<8x32xbf16>
    %102 = vector.extract_strided_slice %101 {offsets = [0, 0], sizes = [8, 8], strides = [1, 1]} : vector<8x32xbf16> to vector<8x8xbf16>
    %103 = vector.shape_cast %102 : vector<8x8xbf16> to vector<1x8x8xbf16>
    %104 = vector.extract_strided_slice %101 {offsets = [0, 8], sizes = [8, 8], strides = [1, 1]} : vector<8x32xbf16> to vector<8x8xbf16>
    %105 = vector.shape_cast %104 : vector<8x8xbf16> to vector<1x8x8xbf16>
    %106 = vector.extract_strided_slice %101 {offsets = [0, 16], sizes = [8, 8], strides = [1, 1]} : vector<8x32xbf16> to vector<8x8xbf16>
    %107 = vector.shape_cast %106 : vector<8x8xbf16> to vector<1x8x8xbf16>
    %108 = vector.extract_strided_slice %101 {offsets = [0, 24], sizes = [8, 8], strides = [1, 1]} : vector<8x32xbf16> to vector<8x8xbf16>
    %109 = vector.shape_cast %108 : vector<8x8xbf16> to vector<1x8x8xbf16>
    %110 = tpu.concatenate %94, %96, %98, %100, %103, %105, %107, %109 in 0 : vector<1x8x8xbf16>, vector<1x8x8xbf16>, vector<1x8x8xbf16>, vector<1x8x8xbf16>, vector<1x8x8xbf16>, vector<1x8x8xbf16>, vector<1x8x8xbf16>, vector<1x8x8xbf16> -> vector<8x8x8xbf16>
    "tpu.trace_start"() <{level = 10 : i32, message = "gqd,gkd->gqk"}> : () -> ()
    %cst_31 = arith.constant dense<0.000000e+00> : vector<8x8x8xf32>
    %111 = tpu.matmul %70, %90, %cst_31 {dimension_numbers = #tpu.dot_dimension_numbers<[2], [2], [1], [1], [0, 0, 0, 1, 1, 1], [0], [0]>} : vector<8x8x8xbf16>, vector<8x8x8xbf16>, vector<8x8x8xf32> -> vector<8x8x8xf32>
    "tpu.trace_stop"() : () -> ()
    %112 = vector.shape_cast %111 : vector<8x8x8xf32> to vector<2x4x8x8xf32>
    %cst_32 = arith.constant -1.000000e+09 : f32
    %113 = vector.shape_cast %24 : vector<2x1x8x8xi1> to vector<2x1x8x8xi1>
    %114 = vector.broadcast %113 : vector<2x1x8x8xi1> to vector<2x4x8x8xi1>
    %115 = vector.broadcast %cst_32 : f32 to vector<2x4x8x8xf32>
    %116 = arith.select %114, %112, %115 : vector<2x4x8x8xi1>, vector<2x4x8x8xf32>
    %cst_33 = arith.constant dense<0xFF800000> : vector<2x4x8xf32>
    %117 = vector.multi_reduction <maximumf>, %116, %cst_33 [3] : vector<2x4x8x8xf32> to vector<2x4x8xf32>
    %118 = vector.shape_cast %117 : vector<2x4x8xf32> to vector<2x4x8x1xf32>
    %119 = vector.broadcast %118 : vector<2x4x8x1xf32> to vector<2x4x8x8xf32>
    %120 = arith.subf %116, %119 : vector<2x4x8x8xf32>
    %121 = math.exp %120 : vector<2x4x8x8xf32>
    %cst_34 = arith.constant dense<0.000000e+00> : vector<2x4x8xf32>
    %122 = vector.multi_reduction <add>, %121, %cst_34 [3] : vector<2x4x8x8xf32> to vector<2x4x8xf32>
    %123 = vector.shape_cast %122 : vector<2x4x8xf32> to vector<2x4x8x1xf32>
    %124 = tpu.reciprocal %123 {approx = true} : vector<2x4x8x1xf32> -> vector<2x4x8x1xf32>
    %125 = vector.broadcast %124 : vector<2x4x8x1xf32> to vector<2x4x8x8xf32>
    %126 = arith.mulf %121, %125 : vector<2x4x8x8xf32>
    %127 = vector.shape_cast %126 : vector<2x4x8x8xf32> to vector<8x8x8xf32>
    %128 = arith.truncf %127 : vector<8x8x8xf32> to vector<8x8x8xbf16>
    "tpu.trace_start"() <{level = 10 : i32, message = "gqk,gkd->gqd"}> : () -> ()
    %cst_35 = arith.constant dense<0.000000e+00> : vector<8x8x8xf32>
    %129 = tpu.matmul %128, %110, %cst_35 {dimension_numbers = #tpu.dot_dimension_numbers<[2], [1], [1], [2], [0, 0, 0, 1, 1, 2], [0], [0]>} : vector<8x8x8xbf16>, vector<8x8x8xbf16>, vector<8x8x8xf32> -> vector<8x8x8xf32>
    "tpu.trace_stop"() : () -> ()
    %130 = arith.truncf %129 : vector<8x8x8xf32> to vector<8x8x8xbf16>
    %131 = vector.extract_strided_slice %130 {offsets = [0, 0, 0], sizes = [1, 8, 8], strides = [1, 1, 1]} : vector<8x8x8xbf16> to vector<1x8x8xbf16>
    %132 = vector.shape_cast %131 : vector<1x8x8xbf16> to vector<8x8xbf16>
    %133 = vector.extract_strided_slice %130 {offsets = [1, 0, 0], sizes = [1, 8, 8], strides = [1, 1, 1]} : vector<8x8x8xbf16> to vector<1x8x8xbf16>
    %134 = vector.shape_cast %133 : vector<1x8x8xbf16> to vector<8x8xbf16>
    %135 = vector.extract_strided_slice %130 {offsets = [2, 0, 0], sizes = [1, 8, 8], strides = [1, 1, 1]} : vector<8x8x8xbf16> to vector<1x8x8xbf16>
    %136 = vector.shape_cast %135 : vector<1x8x8xbf16> to vector<8x8xbf16>
    %137 = vector.extract_strided_slice %130 {offsets = [3, 0, 0], sizes = [1, 8, 8], strides = [1, 1, 1]} : vector<8x8x8xbf16> to vector<1x8x8xbf16>
    %138 = vector.shape_cast %137 : vector<1x8x8xbf16> to vector<8x8xbf16>
    %139 = tpu.concatenate %132, %134, %136, %138 in 1 : vector<8x8xbf16>, vector<8x8xbf16>, vector<8x8xbf16>, vector<8x8xbf16> -> vector<8x32xbf16>
    %140 = vector.extract_strided_slice %130 {offsets = [4, 0, 0], sizes = [1, 8, 8], strides = [1, 1, 1]} : vector<8x8x8xbf16> to vector<1x8x8xbf16>
    %141 = vector.shape_cast %140 : vector<1x8x8xbf16> to vector<8x8xbf16>
    %142 = vector.extract_strided_slice %130 {offsets = [5, 0, 0], sizes = [1, 8, 8], strides = [1, 1, 1]} : vector<8x8x8xbf16> to vector<1x8x8xbf16>
    %143 = vector.shape_cast %142 : vector<1x8x8xbf16> to vector<8x8xbf16>
    %144 = vector.extract_strided_slice %130 {offsets = [6, 0, 0], sizes = [1, 8, 8], strides = [1, 1, 1]} : vector<8x8x8xbf16> to vector<1x8x8xbf16>
    %145 = vector.shape_cast %144 : vector<1x8x8xbf16> to vector<8x8xbf16>
    %146 = vector.extract_strided_slice %130 {offsets = [7, 0, 0], sizes = [1, 8, 8], strides = [1, 1, 1]} : vector<8x8x8xbf16> to vector<1x8x8xbf16>
    %147 = vector.shape_cast %146 : vector<1x8x8xbf16> to vector<8x8xbf16>
    %148 = tpu.concatenate %141, %143, %145, %147 in 1 : vector<8x8xbf16>, vector<8x8xbf16>, vector<8x8xbf16>, vector<8x8xbf16> -> vector<8x32xbf16>
    %149 = tpu.concatenate %139, %148 in 0 : vector<8x32xbf16>, vector<8x32xbf16> -> vector<16x32xbf16>
    %150 = vector.extract_strided_slice %22 {offsets = [3, 0, 0], sizes = [1, 32, 32], strides = [1, 1, 1]} : vector<4x32x32xbf16> to vector<1x32x32xbf16>
    %151 = vector.shape_cast %150 : vector<1x32x32xbf16> to vector<32x32xbf16>
    %cst_36 = arith.constant dense<0.000000e+00> : vector<16x32xf32>
    %152 = tpu.matmul %149, %151, %cst_36 {dimension_numbers = #tpu.dot_dimension_numbers<[1], [0], [0], [1], [0, 0, 1, 1], [], []>} : vector<16x32xbf16>, vector<32x32xbf16>, vector<16x32xf32> -> vector<16x32xf32>
    %153 = vector.extract_strided_slice %23 {offsets = [3, 0], sizes = [1, 32], strides = [1, 1]} : vector<4x32xf32> to vector<1x32xf32>
    %154 = vector.shape_cast %153 : vector<1x32xf32> to vector<32xf32>
    %155 = vector.shape_cast %154 : vector<32xf32> to vector<1x32xf32>
    %156 = vector.broadcast %155 : vector<1x32xf32> to vector<16x32xf32>
    %157 = arith.addf %152, %156 : vector<16x32xf32>
    %158 = vector.broadcast %5 : vector<16x1xf32> to vector<16x32xf32>
    %159 = arith.mulf %157, %158 : vector<16x32xf32>
    %160 = arith.addf %1, %159 : vector<16x32xf32>
    %161 = vector.extract_strided_slice %19 {offsets = [0, 0], sizes = [1, 32], strides = [1, 1]} : vector<3x32xf32> to vector<1x32xf32>
    %162 = vector.shape_cast %161 : vector<1x32xf32> to vector<32xf32>
    %163 = vector.extract_strided_slice %20 {offsets = [0, 0], sizes = [1, 32], strides = [1, 1]} : vector<3x32xf32> to vector<1x32xf32>
    %164 = vector.shape_cast %163 : vector<1x32xf32> to vector<32xf32>
    %cst_37 = arith.constant dense<0.000000e+00> : vector<16xf32>
    %165 = vector.multi_reduction <add>, %160, %cst_37 [1] : vector<16x32xf32> to vector<16xf32>
    %166 = vector.shape_cast %165 : vector<16xf32> to vector<16x1xf32>
    %cst_38 = arith.constant 3.200000e+01 : f32
    %167 = vector.broadcast %cst_38 : f32 to vector<16x1xf32>
    %168 = arith.divf %166, %167 : vector<16x1xf32>
    %169 = vector.broadcast %168 : vector<16x1xf32> to vector<16x32xf32>
    %170 = arith.subf %160, %169 : vector<16x32xf32>
    %171 = arith.mulf %170, %170 : vector<16x32xf32>
    %cst_39 = arith.constant dense<0.000000e+00> : vector<16xf32>
    %172 = vector.multi_reduction <add>, %171, %cst_39 [1] : vector<16x32xf32> to vector<16xf32>
    %173 = vector.shape_cast %172 : vector<16xf32> to vector<16x1xf32>
    %cst_40 = arith.constant 3.200000e+01 : f32
    %174 = vector.broadcast %cst_40 : f32 to vector<16x1xf32>
    %175 = arith.divf %173, %174 : vector<16x1xf32>
    %176 = vector.broadcast %168 : vector<16x1xf32> to vector<16x32xf32>
    %177 = arith.subf %160, %176 : vector<16x32xf32>
    %cst_41 = arith.constant 9.99999974E-6 : f32
    %178 = vector.broadcast %cst_41 : f32 to vector<16x1xf32>
    %179 = arith.addf %175, %178 : vector<16x1xf32>
    %180 = math.rsqrt %179 : vector<16x1xf32>
    %181 = vector.broadcast %180 : vector<16x1xf32> to vector<16x32xf32>
    %182 = arith.mulf %177, %181 : vector<16x32xf32>
    %183 = vector.shape_cast %162 : vector<32xf32> to vector<1x32xf32>
    %184 = vector.broadcast %183 : vector<1x32xf32> to vector<16x32xf32>
    %185 = arith.mulf %182, %184 : vector<16x32xf32>
    %186 = vector.shape_cast %164 : vector<32xf32> to vector<1x32xf32>
    %187 = vector.broadcast %186 : vector<1x32xf32> to vector<16x32xf32>
    %188 = arith.addf %185, %187 : vector<16x32xf32>
    %189 = arith.truncf %188 : vector<16x32xf32> to vector<16x32xbf16>
    %c0_42 = arith.constant 0 : index
    %c0_43 = arith.constant 0 : index
    %c0_44 = arith.constant 0 : index
    %190 = vector.load %arg9[%c0_42, %c0_43, %c0_44] : memref<4x32x32xbf16, #tpu.memory_space<vmem>>, vector<4x32x32xbf16>
    %c0_45 = arith.constant 0 : index
    %c0_46 = arith.constant 0 : index
    %191 = vector.load %arg10[%c0_45, %c0_46] : memref<4x32xf32, #tpu.memory_space<vmem>>, vector<4x32xf32>
    %192 = vector.shape_cast %18 : vector<2x1x8xi1> to vector<2x1x1x8xi1>
    %193 = vector.extract_strided_slice %190 {offsets = [0, 0, 0], sizes = [1, 32, 32], strides = [1, 1, 1]} : vector<4x32x32xbf16> to vector<1x32x32xbf16>
    %194 = vector.shape_cast %193 : vector<1x32x32xbf16> to vector<32x32xbf16>
    %cst_47 = arith.constant dense<0.000000e+00> : vector<16x32xf32>
    %195 = tpu.matmul %189, %194, %cst_47 {dimension_numbers = #tpu.dot_dimension_numbers<[1], [0], [0], [1], [0, 0, 1, 1], [], []>} : vector<16x32xbf16>, vector<32x32xbf16>, vector<16x32xf32> -> vector<16x32xf32>
    %196 = vector.extract_strided_slice %191 {offsets = [0, 0], sizes = [1, 32], strides = [1, 1]} : vector<4x32xf32> to vector<1x32xf32>
    %197 = vector.shape_cast %196 : vector<1x32xf32> to vector<32xf32>
    %198 = vector.shape_cast %197 : vector<32xf32> to vector<1x32xf32>
    %199 = vector.broadcast %198 : vector<1x32xf32> to vector<16x32xf32>
    %200 = arith.addf %195, %199 : vector<16x32xf32>
    %201 = vector.extract_strided_slice %190 {offsets = [1, 0, 0], sizes = [1, 32, 32], strides = [1, 1, 1]} : vector<4x32x32xbf16> to vector<1x32x32xbf16>
    %202 = vector.shape_cast %201 : vector<1x32x32xbf16> to vector<32x32xbf16>
    %cst_48 = arith.constant dense<0.000000e+00> : vector<16x32xf32>
    %203 = tpu.matmul %3, %202, %cst_48 {dimension_numbers = #tpu.dot_dimension_numbers<[1], [0], [0], [1], [0, 0, 1, 1], [], []>} : vector<16x32xbf16>, vector<32x32xbf16>, vector<16x32xf32> -> vector<16x32xf32>
    %204 = vector.extract_strided_slice %191 {offsets = [1, 0], sizes = [1, 32], strides = [1, 1]} : vector<4x32xf32> to vector<1x32xf32>
    %205 = vector.shape_cast %204 : vector<1x32xf32> to vector<32xf32>
    %206 = vector.shape_cast %205 : vector<32xf32> to vector<1x32xf32>
    %207 = vector.broadcast %206 : vector<1x32xf32> to vector<16x32xf32>
    %208 = arith.addf %203, %207 : vector<16x32xf32>
    %209 = vector.extract_strided_slice %190 {offsets = [2, 0, 0], sizes = [1, 32, 32], strides = [1, 1, 1]} : vector<4x32x32xbf16> to vector<1x32x32xbf16>
    %210 = vector.shape_cast %209 : vector<1x32x32xbf16> to vector<32x32xbf16>
    %cst_49 = arith.constant dense<0.000000e+00> : vector<16x32xf32>
    %211 = tpu.matmul %3, %210, %cst_49 {dimension_numbers = #tpu.dot_dimension_numbers<[1], [0], [0], [1], [0, 0, 1, 1], [], []>} : vector<16x32xbf16>, vector<32x32xbf16>, vector<16x32xf32> -> vector<16x32xf32>
    %212 = vector.extract_strided_slice %191 {offsets = [2, 0], sizes = [1, 32], strides = [1, 1]} : vector<4x32xf32> to vector<1x32xf32>
    %213 = vector.shape_cast %212 : vector<1x32xf32> to vector<32xf32>
    %214 = vector.shape_cast %213 : vector<32xf32> to vector<1x32xf32>
    %215 = vector.broadcast %214 : vector<1x32xf32> to vector<16x32xf32>
    %216 = arith.addf %211, %215 : vector<16x32xf32>
    %cst_50 = arith.constant 0.353553385 : f32
    %217 = vector.broadcast %cst_50 : f32 to vector<16x32xf32>
    %218 = arith.mulf %200, %217 : vector<16x32xf32>
    %219 = arith.truncf %218 : vector<16x32xf32> to vector<16x32xbf16>
    %220 = vector.extract_strided_slice %219 {offsets = [0, 0], sizes = [8, 32], strides = [1, 1]} : vector<16x32xbf16> to vector<8x32xbf16>
    %221 = vector.extract_strided_slice %220 {offsets = [0, 0], sizes = [8, 8], strides = [1, 1]} : vector<8x32xbf16> to vector<8x8xbf16>
    %222 = vector.shape_cast %221 : vector<8x8xbf16> to vector<1x8x8xbf16>
    %223 = vector.extract_strided_slice %220 {offsets = [0, 8], sizes = [8, 8], strides = [1, 1]} : vector<8x32xbf16> to vector<8x8xbf16>
    %224 = vector.shape_cast %223 : vector<8x8xbf16> to vector<1x8x8xbf16>
    %225 = vector.extract_strided_slice %220 {offsets = [0, 16], sizes = [8, 8], strides = [1, 1]} : vector<8x32xbf16> to vector<8x8xbf16>
    %226 = vector.shape_cast %225 : vector<8x8xbf16> to vector<1x8x8xbf16>
    %227 = vector.extract_strided_slice %220 {offsets = [0, 24], sizes = [8, 8], strides = [1, 1]} : vector<8x32xbf16> to vector<8x8xbf16>
    %228 = vector.shape_cast %227 : vector<8x8xbf16> to vector<1x8x8xbf16>
    %229 = vector.extract_strided_slice %219 {offsets = [8, 0], sizes = [8, 32], strides = [1, 1]} : vector<16x32xbf16> to vector<8x32xbf16>
    %230 = vector.extract_strided_slice %229 {offsets = [0, 0], sizes = [8, 8], strides = [1, 1]} : vector<8x32xbf16> to vector<8x8xbf16>
    %231 = vector.shape_cast %230 : vector<8x8xbf16> to vector<1x8x8xbf16>
    %232 = vector.extract_strided_slice %229 {offsets = [0, 8], sizes = [8, 8], strides = [1, 1]} : vector<8x32xbf16> to vector<8x8xbf16>
    %233 = vector.shape_cast %232 : vector<8x8xbf16> to vector<1x8x8xbf16>
    %234 = vector.extract_strided_slice %229 {offsets = [0, 16], sizes = [8, 8], strides = [1, 1]} : vector<8x32xbf16> to vector<8x8xbf16>
    %235 = vector.shape_cast %234 : vector<8x8xbf16> to vector<1x8x8xbf16>
    %236 = vector.extract_strided_slice %229 {offsets = [0, 24], sizes = [8, 8], strides = [1, 1]} : vector<8x32xbf16> to vector<8x8xbf16>
    %237 = vector.shape_cast %236 : vector<8x8xbf16> to vector<1x8x8xbf16>
    %238 = tpu.concatenate %222, %224, %226, %228, %231, %233, %235, %237 in 0 : vector<1x8x8xbf16>, vector<1x8x8xbf16>, vector<1x8x8xbf16>, vector<1x8x8xbf16>, vector<1x8x8xbf16>, vector<1x8x8xbf16>, vector<1x8x8xbf16>, vector<1x8x8xbf16> -> vector<8x8x8xbf16>
    %239 = arith.truncf %208 : vector<16x32xf32> to vector<16x32xbf16>
    %240 = vector.extract_strided_slice %239 {offsets = [0, 0], sizes = [8, 32], strides = [1, 1]} : vector<16x32xbf16> to vector<8x32xbf16>
    %241 = vector.extract_strided_slice %240 {offsets = [0, 0], sizes = [8, 8], strides = [1, 1]} : vector<8x32xbf16> to vector<8x8xbf16>
    %242 = vector.shape_cast %241 : vector<8x8xbf16> to vector<1x8x8xbf16>
    %243 = vector.extract_strided_slice %240 {offsets = [0, 8], sizes = [8, 8], strides = [1, 1]} : vector<8x32xbf16> to vector<8x8xbf16>
    %244 = vector.shape_cast %243 : vector<8x8xbf16> to vector<1x8x8xbf16>
    %245 = vector.extract_strided_slice %240 {offsets = [0, 16], sizes = [8, 8], strides = [1, 1]} : vector<8x32xbf16> to vector<8x8xbf16>
    %246 = vector.shape_cast %245 : vector<8x8xbf16> to vector<1x8x8xbf16>
    %247 = vector.extract_strided_slice %240 {offsets = [0, 24], sizes = [8, 8], strides = [1, 1]} : vector<8x32xbf16> to vector<8x8xbf16>
    %248 = vector.shape_cast %247 : vector<8x8xbf16> to vector<1x8x8xbf16>
    %249 = vector.extract_strided_slice %239 {offsets = [8, 0], sizes = [8, 32], strides = [1, 1]} : vector<16x32xbf16> to vector<8x32xbf16>
    %250 = vector.extract_strided_slice %249 {offsets = [0, 0], sizes = [8, 8], strides = [1, 1]} : vector<8x32xbf16> to vector<8x8xbf16>
    %251 = vector.shape_cast %250 : vector<8x8xbf16> to vector<1x8x8xbf16>
    %252 = vector.extract_strided_slice %249 {offsets = [0, 8], sizes = [8, 8], strides = [1, 1]} : vector<8x32xbf16> to vector<8x8xbf16>
    %253 = vector.shape_cast %252 : vector<8x8xbf16> to vector<1x8x8xbf16>
    %254 = vector.extract_strided_slice %249 {offsets = [0, 16], sizes = [8, 8], strides = [1, 1]} : vector<8x32xbf16> to vector<8x8xbf16>
    %255 = vector.shape_cast %254 : vector<8x8xbf16> to vector<1x8x8xbf16>
    %256 = vector.extract_strided_slice %249 {offsets = [0, 24], sizes = [8, 8], strides = [1, 1]} : vector<8x32xbf16> to vector<8x8xbf16>
    %257 = vector.shape_cast %256 : vector<8x8xbf16> to vector<1x8x8xbf16>
    %258 = tpu.concatenate %242, %244, %246, %248, %251, %253, %255, %257 in 0 : vector<1x8x8xbf16>, vector<1x8x8xbf16>, vector<1x8x8xbf16>, vector<1x8x8xbf16>, vector<1x8x8xbf16>, vector<1x8x8xbf16>, vector<1x8x8xbf16>, vector<1x8x8xbf16> -> vector<8x8x8xbf16>
    %259 = arith.truncf %216 : vector<16x32xf32> to vector<16x32xbf16>
    %260 = vector.extract_strided_slice %259 {offsets = [0, 0], sizes = [8, 32], strides = [1, 1]} : vector<16x32xbf16> to vector<8x32xbf16>
    %261 = vector.extract_strided_slice %260 {offsets = [0, 0], sizes = [8, 8], strides = [1, 1]} : vector<8x32xbf16> to vector<8x8xbf16>
    %262 = vector.shape_cast %261 : vector<8x8xbf16> to vector<1x8x8xbf16>
    %263 = vector.extract_strided_slice %260 {offsets = [0, 8], sizes = [8, 8], strides = [1, 1]} : vector<8x32xbf16> to vector<8x8xbf16>
    %264 = vector.shape_cast %263 : vector<8x8xbf16> to vector<1x8x8xbf16>
    %265 = vector.extract_strided_slice %260 {offsets = [0, 16], sizes = [8, 8], strides = [1, 1]} : vector<8x32xbf16> to vector<8x8xbf16>
    %266 = vector.shape_cast %265 : vector<8x8xbf16> to vector<1x8x8xbf16>
    %267 = vector.extract_strided_slice %260 {offsets = [0, 24], sizes = [8, 8], strides = [1, 1]} : vector<8x32xbf16> to vector<8x8xbf16>
    %268 = vector.shape_cast %267 : vector<8x8xbf16> to vector<1x8x8xbf16>
    %269 = vector.extract_strided_slice %259 {offsets = [8, 0], sizes = [8, 32], strides = [1, 1]} : vector<16x32xbf16> to vector<8x32xbf16>
    %270 = vector.extract_strided_slice %269 {offsets = [0, 0], sizes = [8, 8], strides = [1, 1]} : vector<8x32xbf16> to vector<8x8xbf16>
    %271 = vector.shape_cast %270 : vector<8x8xbf16> to vector<1x8x8xbf16>
    %272 = vector.extract_strided_slice %269 {offsets = [0, 8], sizes = [8, 8], strides = [1, 1]} : vector<8x32xbf16> to vector<8x8xbf16>
    %273 = vector.shape_cast %272 : vector<8x8xbf16> to vector<1x8x8xbf16>
    %274 = vector.extract_strided_slice %269 {offsets = [0, 16], sizes = [8, 8], strides = [1, 1]} : vector<8x32xbf16> to vector<8x8xbf16>
    %275 = vector.shape_cast %274 : vector<8x8xbf16> to vector<1x8x8xbf16>
    %276 = vector.extract_strided_slice %269 {offsets = [0, 24], sizes = [8, 8], strides = [1, 1]} : vector<8x32xbf16> to vector<8x8xbf16>
    %277 = vector.shape_cast %276 : vector<8x8xbf16> to vector<1x8x8xbf16>
    %278 = tpu.concatenate %262, %264, %266, %268, %271, %273, %275, %277 in 0 : vector<1x8x8xbf16>, vector<1x8x8xbf16>, vector<1x8x8xbf16>, vector<1x8x8xbf16>, vector<1x8x8xbf16>, vector<1x8x8xbf16>, vector<1x8x8xbf16>, vector<1x8x8xbf16> -> vector<8x8x8xbf16>
    "tpu.trace_start"() <{level = 10 : i32, message = "gqd,gkd->gqk"}> : () -> ()
    %cst_51 = arith.constant dense<0.000000e+00> : vector<8x8x8xf32>
    %279 = tpu.matmul %238, %258, %cst_51 {dimension_numbers = #tpu.dot_dimension_numbers<[2], [2], [1], [1], [0, 0, 0, 1, 1, 1], [0], [0]>} : vector<8x8x8xbf16>, vector<8x8x8xbf16>, vector<8x8x8xf32> -> vector<8x8x8xf32>
    "tpu.trace_stop"() : () -> ()
    %280 = vector.shape_cast %279 : vector<8x8x8xf32> to vector<2x4x8x8xf32>
    %cst_52 = arith.constant -1.000000e+09 : f32
    %281 = vector.shape_cast %192 : vector<2x1x1x8xi1> to vector<2x1x1x8xi1>
    %282 = vector.broadcast %281 : vector<2x1x1x8xi1> to vector<2x4x8x8xi1>
    %283 = vector.broadcast %cst_52 : f32 to vector<2x4x8x8xf32>
    %284 = arith.select %282, %280, %283 : vector<2x4x8x8xi1>, vector<2x4x8x8xf32>
    %cst_53 = arith.constant dense<0xFF800000> : vector<2x4x8xf32>
    %285 = vector.multi_reduction <maximumf>, %284, %cst_53 [3] : vector<2x4x8x8xf32> to vector<2x4x8xf32>
    %286 = vector.shape_cast %285 : vector<2x4x8xf32> to vector<2x4x8x1xf32>
    %287 = vector.broadcast %286 : vector<2x4x8x1xf32> to vector<2x4x8x8xf32>
    %288 = arith.subf %284, %287 : vector<2x4x8x8xf32>
    %289 = math.exp %288 : vector<2x4x8x8xf32>
    %cst_54 = arith.constant dense<0.000000e+00> : vector<2x4x8xf32>
    %290 = vector.multi_reduction <add>, %289, %cst_54 [3] : vector<2x4x8x8xf32> to vector<2x4x8xf32>
    %291 = vector.shape_cast %290 : vector<2x4x8xf32> to vector<2x4x8x1xf32>
    %292 = tpu.reciprocal %291 {approx = true} : vector<2x4x8x1xf32> -> vector<2x4x8x1xf32>
    %293 = vector.broadcast %292 : vector<2x4x8x1xf32> to vector<2x4x8x8xf32>
    %294 = arith.mulf %289, %293 : vector<2x4x8x8xf32>
    %295 = vector.shape_cast %294 : vector<2x4x8x8xf32> to vector<8x8x8xf32>
    %296 = arith.truncf %295 : vector<8x8x8xf32> to vector<8x8x8xbf16>
    "tpu.trace_start"() <{level = 10 : i32, message = "gqk,gkd->gqd"}> : () -> ()
    %cst_55 = arith.constant dense<0.000000e+00> : vector<8x8x8xf32>
    %297 = tpu.matmul %296, %278, %cst_55 {dimension_numbers = #tpu.dot_dimension_numbers<[2], [1], [1], [2], [0, 0, 0, 1, 1, 2], [0], [0]>} : vector<8x8x8xbf16>, vector<8x8x8xbf16>, vector<8x8x8xf32> -> vector<8x8x8xf32>
    "tpu.trace_stop"() : () -> ()
    %298 = arith.truncf %297 : vector<8x8x8xf32> to vector<8x8x8xbf16>
    %299 = vector.extract_strided_slice %298 {offsets = [0, 0, 0], sizes = [1, 8, 8], strides = [1, 1, 1]} : vector<8x8x8xbf16> to vector<1x8x8xbf16>
    %300 = vector.shape_cast %299 : vector<1x8x8xbf16> to vector<8x8xbf16>
    %301 = vector.extract_strided_slice %298 {offsets = [1, 0, 0], sizes = [1, 8, 8], strides = [1, 1, 1]} : vector<8x8x8xbf16> to vector<1x8x8xbf16>
    %302 = vector.shape_cast %301 : vector<1x8x8xbf16> to vector<8x8xbf16>
    %303 = vector.extract_strided_slice %298 {offsets = [2, 0, 0], sizes = [1, 8, 8], strides = [1, 1, 1]} : vector<8x8x8xbf16> to vector<1x8x8xbf16>
    %304 = vector.shape_cast %303 : vector<1x8x8xbf16> to vector<8x8xbf16>
    %305 = vector.extract_strided_slice %298 {offsets = [3, 0, 0], sizes = [1, 8, 8], strides = [1, 1, 1]} : vector<8x8x8xbf16> to vector<1x8x8xbf16>
    %306 = vector.shape_cast %305 : vector<1x8x8xbf16> to vector<8x8xbf16>
    %307 = tpu.concatenate %300, %302, %304, %306 in 1 : vector<8x8xbf16>, vector<8x8xbf16>, vector<8x8xbf16>, vector<8x8xbf16> -> vector<8x32xbf16>
    %308 = vector.extract_strided_slice %298 {offsets = [4, 0, 0], sizes = [1, 8, 8], strides = [1, 1, 1]} : vector<8x8x8xbf16> to vector<1x8x8xbf16>
    %309 = vector.shape_cast %308 : vector<1x8x8xbf16> to vector<8x8xbf16>
    %310 = vector.extract_strided_slice %298 {offsets = [5, 0, 0], sizes = [1, 8, 8], strides = [1, 1, 1]} : vector<8x8x8xbf16> to vector<1x8x8xbf16>
    %311 = vector.shape_cast %310 : vector<1x8x8xbf16> to vector<8x8xbf16>
    %312 = vector.extract_strided_slice %298 {offsets = [6, 0, 0], sizes = [1, 8, 8], strides = [1, 1, 1]} : vector<8x8x8xbf16> to vector<1x8x8xbf16>
    %313 = vector.shape_cast %312 : vector<1x8x8xbf16> to vector<8x8xbf16>
    %314 = vector.extract_strided_slice %298 {offsets = [7, 0, 0], sizes = [1, 8, 8], strides = [1, 1, 1]} : vector<8x8x8xbf16> to vector<1x8x8xbf16>
    %315 = vector.shape_cast %314 : vector<1x8x8xbf16> to vector<8x8xbf16>
    %316 = tpu.concatenate %309, %311, %313, %315 in 1 : vector<8x8xbf16>, vector<8x8xbf16>, vector<8x8xbf16>, vector<8x8xbf16> -> vector<8x32xbf16>
    %317 = tpu.concatenate %307, %316 in 0 : vector<8x32xbf16>, vector<8x32xbf16> -> vector<16x32xbf16>
    %318 = vector.extract_strided_slice %190 {offsets = [3, 0, 0], sizes = [1, 32, 32], strides = [1, 1, 1]} : vector<4x32x32xbf16> to vector<1x32x32xbf16>
    %319 = vector.shape_cast %318 : vector<1x32x32xbf16> to vector<32x32xbf16>
    %cst_56 = arith.constant dense<0.000000e+00> : vector<16x32xf32>
    %320 = tpu.matmul %317, %319, %cst_56 {dimension_numbers = #tpu.dot_dimension_numbers<[1], [0], [0], [1], [0, 0, 1, 1], [], []>} : vector<16x32xbf16>, vector<32x32xbf16>, vector<16x32xf32> -> vector<16x32xf32>
    %321 = vector.extract_strided_slice %191 {offsets = [3, 0], sizes = [1, 32], strides = [1, 1]} : vector<4x32xf32> to vector<1x32xf32>
    %322 = vector.shape_cast %321 : vector<1x32xf32> to vector<32xf32>
    %323 = vector.shape_cast %322 : vector<32xf32> to vector<1x32xf32>
    %324 = vector.broadcast %323 : vector<1x32xf32> to vector<16x32xf32>
    %325 = arith.addf %320, %324 : vector<16x32xf32>
    %326 = vector.broadcast %5 : vector<16x1xf32> to vector<16x32xf32>
    %327 = arith.mulf %325, %326 : vector<16x32xf32>
    %328 = arith.addf %188, %327 : vector<16x32xf32>
    %329 = vector.extract_strided_slice %19 {offsets = [1, 0], sizes = [1, 32], strides = [1, 1]} : vector<3x32xf32> to vector<1x32xf32>
    %330 = vector.shape_cast %329 : vector<1x32xf32> to vector<32xf32>
    %331 = vector.extract_strided_slice %20 {offsets = [1, 0], sizes = [1, 32], strides = [1, 1]} : vector<3x32xf32> to vector<1x32xf32>
    %332 = vector.shape_cast %331 : vector<1x32xf32> to vector<32xf32>
    %cst_57 = arith.constant dense<0.000000e+00> : vector<16xf32>
    %333 = vector.multi_reduction <add>, %328, %cst_57 [1] : vector<16x32xf32> to vector<16xf32>
    %334 = vector.shape_cast %333 : vector<16xf32> to vector<16x1xf32>
    %cst_58 = arith.constant 3.200000e+01 : f32
    %335 = vector.broadcast %cst_58 : f32 to vector<16x1xf32>
    %336 = arith.divf %334, %335 : vector<16x1xf32>
    %337 = vector.broadcast %336 : vector<16x1xf32> to vector<16x32xf32>
    %338 = arith.subf %328, %337 : vector<16x32xf32>
    %339 = arith.mulf %338, %338 : vector<16x32xf32>
    %cst_59 = arith.constant dense<0.000000e+00> : vector<16xf32>
    %340 = vector.multi_reduction <add>, %339, %cst_59 [1] : vector<16x32xf32> to vector<16xf32>
    %341 = vector.shape_cast %340 : vector<16xf32> to vector<16x1xf32>
    %cst_60 = arith.constant 3.200000e+01 : f32
    %342 = vector.broadcast %cst_60 : f32 to vector<16x1xf32>
    %343 = arith.divf %341, %342 : vector<16x1xf32>
    %344 = vector.broadcast %336 : vector<16x1xf32> to vector<16x32xf32>
    %345 = arith.subf %328, %344 : vector<16x32xf32>
    %cst_61 = arith.constant 9.99999974E-6 : f32
    %346 = vector.broadcast %cst_61 : f32 to vector<16x1xf32>
    %347 = arith.addf %343, %346 : vector<16x1xf32>
    %348 = math.rsqrt %347 : vector<16x1xf32>
    %349 = vector.broadcast %348 : vector<16x1xf32> to vector<16x32xf32>
    %350 = arith.mulf %345, %349 : vector<16x32xf32>
    %351 = vector.shape_cast %330 : vector<32xf32> to vector<1x32xf32>
    %352 = vector.broadcast %351 : vector<1x32xf32> to vector<16x32xf32>
    %353 = arith.mulf %350, %352 : vector<16x32xf32>
    %354 = vector.shape_cast %332 : vector<32xf32> to vector<1x32xf32>
    %355 = vector.broadcast %354 : vector<1x32xf32> to vector<16x32xf32>
    %356 = arith.addf %353, %355 : vector<16x32xf32>
    %357 = arith.truncf %356 : vector<16x32xf32> to vector<16x32xbf16>
    %c0_62 = arith.constant 0 : index
    %c0_63 = arith.constant 0 : index
    %358 = vector.load %arg13[%c0_62, %c0_63] : memref<32x64xbf16, #tpu.memory_space<vmem>>, vector<32x64xbf16>
    %cst_64 = arith.constant dense<0.000000e+00> : vector<16x64xf32>
    %359 = tpu.matmul %357, %358, %cst_64 {dimension_numbers = #tpu.dot_dimension_numbers<[1], [0], [0], [1], [0, 0, 1, 1], [], []>} : vector<16x32xbf16>, vector<32x64xbf16>, vector<16x64xf32> -> vector<16x64xf32>
    %c0_65 = arith.constant 0 : index
    %c0_66 = arith.constant 0 : index
    %360 = vector.load %arg14[%c0_65, %c0_66] : memref<1x64xf32, #tpu.memory_space<vmem>>, vector<1x64xf32>
    %361 = vector.broadcast %360 : vector<1x64xf32> to vector<16x64xf32>
    %362 = arith.addf %359, %361 : vector<16x64xf32>
    %cst_67 = arith.constant 0.000000e+00 : f32
    %363 = vector.broadcast %cst_67 : f32 to vector<16x64xf32>
    %364 = arith.maximumf %362, %363 : vector<16x64xf32>
    %365 = arith.truncf %364 : vector<16x64xf32> to vector<16x64xbf16>
    %c0_68 = arith.constant 0 : index
    %c0_69 = arith.constant 0 : index
    %366 = vector.load %arg15[%c0_68, %c0_69] : memref<64x32xbf16, #tpu.memory_space<vmem>>, vector<64x32xbf16>
    %cst_70 = arith.constant dense<0.000000e+00> : vector<16x32xf32>
    %367 = tpu.matmul %365, %366, %cst_70 {dimension_numbers = #tpu.dot_dimension_numbers<[1], [0], [0], [1], [0, 0, 1, 1], [], []>} : vector<16x64xbf16>, vector<64x32xbf16>, vector<16x32xf32> -> vector<16x32xf32>
    %c0_71 = arith.constant 0 : index
    %c0_72 = arith.constant 0 : index
    %368 = vector.load %arg16[%c0_71, %c0_72] : memref<1x32xf32, #tpu.memory_space<vmem>>, vector<1x32xf32>
    %369 = vector.broadcast %368 : vector<1x32xf32> to vector<16x32xf32>
    %370 = arith.addf %367, %369 : vector<16x32xf32>
    %371 = vector.broadcast %5 : vector<16x1xf32> to vector<16x32xf32>
    %372 = arith.mulf %370, %371 : vector<16x32xf32>
    %373 = arith.addf %356, %372 : vector<16x32xf32>
    %374 = vector.extract_strided_slice %19 {offsets = [2, 0], sizes = [1, 32], strides = [1, 1]} : vector<3x32xf32> to vector<1x32xf32>
    %375 = vector.shape_cast %374 : vector<1x32xf32> to vector<32xf32>
    %376 = vector.extract_strided_slice %20 {offsets = [2, 0], sizes = [1, 32], strides = [1, 1]} : vector<3x32xf32> to vector<1x32xf32>
    %377 = vector.shape_cast %376 : vector<1x32xf32> to vector<32xf32>
    %cst_73 = arith.constant dense<0.000000e+00> : vector<16xf32>
    %378 = vector.multi_reduction <add>, %373, %cst_73 [1] : vector<16x32xf32> to vector<16xf32>
    %379 = vector.shape_cast %378 : vector<16xf32> to vector<16x1xf32>
    %cst_74 = arith.constant 3.200000e+01 : f32
    %380 = vector.broadcast %cst_74 : f32 to vector<16x1xf32>
    %381 = arith.divf %379, %380 : vector<16x1xf32>
    %382 = vector.broadcast %381 : vector<16x1xf32> to vector<16x32xf32>
    %383 = arith.subf %373, %382 : vector<16x32xf32>
    %384 = arith.mulf %383, %383 : vector<16x32xf32>
    %cst_75 = arith.constant dense<0.000000e+00> : vector<16xf32>
    %385 = vector.multi_reduction <add>, %384, %cst_75 [1] : vector<16x32xf32> to vector<16xf32>
    %386 = vector.shape_cast %385 : vector<16xf32> to vector<16x1xf32>
    %cst_76 = arith.constant 3.200000e+01 : f32
    %387 = vector.broadcast %cst_76 : f32 to vector<16x1xf32>
    %388 = arith.divf %386, %387 : vector<16x1xf32>
    %389 = vector.broadcast %381 : vector<16x1xf32> to vector<16x32xf32>
    %390 = arith.subf %373, %389 : vector<16x32xf32>
    %cst_77 = arith.constant 9.99999974E-6 : f32
    %391 = vector.broadcast %cst_77 : f32 to vector<16x1xf32>
    %392 = arith.addf %388, %391 : vector<16x1xf32>
    %393 = math.rsqrt %392 : vector<16x1xf32>
    %394 = vector.broadcast %393 : vector<16x1xf32> to vector<16x32xf32>
    %395 = arith.mulf %390, %394 : vector<16x32xf32>
    %396 = vector.shape_cast %375 : vector<32xf32> to vector<1x32xf32>
    %397 = vector.broadcast %396 : vector<1x32xf32> to vector<16x32xf32>
    %398 = arith.mulf %395, %397 : vector<16x32xf32>
    %399 = vector.shape_cast %377 : vector<32xf32> to vector<1x32xf32>
    %400 = vector.broadcast %399 : vector<1x32xf32> to vector<16x32xf32>
    %401 = arith.addf %398, %400 : vector<16x32xf32>
    %402 = vector.broadcast %5 : vector<16x1xf32> to vector<16x32xf32>
    %403 = arith.mulf %401, %402 : vector<16x32xf32>
    %404 = vector.shape_cast %403 : vector<16x32xf32> to vector<2x8x32xf32>
    %c0_78 = arith.constant 0 : index
    %c0_79 = arith.constant 0 : index
    %c0_80 = arith.constant 0 : index
    %405 = vector.load %arg17[%c0_78, %c0_79, %c0_80] : memref<2x8x32xf32, #tpu.memory_space<vmem>>, vector<2x8x32xf32>
    tpu.vector_store %arg17[%c0_78, %c0_79, %c0_80], %404 {strides = array<i32>} : memref<2x8x32xf32, #tpu.memory_space<vmem>>, vector<2x8x32xf32>,
    return
  }
  func.func @transform_0(%arg0: i32) -> (i32, i32, i32) {
    %c0_i32 = arith.constant 0 : i32
    %c0_i32_0 = arith.constant 0 : i32
    %c0_i32_1 = arith.constant 0 : i32
    return %arg0, %c0_i32, %c0_i32_0 : i32, i32, i32
  }
  func.func @transform_1(%arg0: i32) -> (i32, i32, i32) {
    %c0_i32 = arith.constant 0 : i32
    %c0_i32_0 = arith.constant 0 : i32
    %c0_i32_1 = arith.constant 0 : i32
    return %arg0, %c0_i32, %c0_i32_0 : i32, i32, i32
  }
  func.func @transform_2(%arg0: i32) -> (i32, i32, i32) {
    %c0_i32 = arith.constant 0 : i32
    %c0_i32_0 = arith.constant 0 : i32
    %c0_i32_1 = arith.constant 0 : i32
    return %arg0, %c0_i32, %c0_i32_0 : i32, i32, i32
  }
  func.func @transform_3(%arg0: i32) -> (i32, i32, i32) {
    %c0_i32 = arith.constant 0 : i32
    %c0_i32_0 = arith.constant 0 : i32
    %c0_i32_1 = arith.constant 0 : i32
    return %arg0, %c0_i32, %c0_i32_0 : i32, i32, i32
  }
  func.func @transform_4(%arg0: i32) -> (i32, i32, i32) {
    %c0_i32 = arith.constant 0 : i32
    %c0_i32_0 = arith.constant 0 : i32
    %c0_i32_1 = arith.constant 0 : i32
    return %arg0, %c0_i32, %c0_i32_0 : i32, i32, i32
  }
  func.func @transform_5(%arg0: i32) -> (i32, i32) {
    %c0_i32 = arith.constant 0 : i32
    %c0_i32_0 = arith.constant 0 : i32
    %c0_i32_1 = arith.constant 0 : i32
    return %c0_i32, %c0_i32_0 : i32, i32
  }
  func.func @transform_6(%arg0: i32) -> (i32, i32, i32) {
    %c0_i32 = arith.constant 0 : i32
    %c0_i32_0 = arith.constant 0 : i32
    %c0_i32_1 = arith.constant 0 : i32
    %c0_i32_2 = arith.constant 0 : i32
    return %c0_i32, %c0_i32_0, %c0_i32_1 : i32, i32, i32
  }
  func.func @transform_7(%arg0: i32) -> (i32, i32) {
    %c0_i32 = arith.constant 0 : i32
    %c0_i32_0 = arith.constant 0 : i32
    %c0_i32_1 = arith.constant 0 : i32
    return %c0_i32, %c0_i32_0 : i32, i32
  }
  func.func @transform_8(%arg0: i32) -> (i32, i32, i32) {
    %c0_i32 = arith.constant 0 : i32
    %c0_i32_0 = arith.constant 0 : i32
    %c0_i32_1 = arith.constant 0 : i32
    %c0_i32_2 = arith.constant 0 : i32
    return %c0_i32, %c0_i32_0, %c0_i32_1 : i32, i32, i32
  }
  func.func @transform_9(%arg0: i32) -> (i32, i32) {
    %c0_i32 = arith.constant 0 : i32
    %c0_i32_0 = arith.constant 0 : i32
    %c0_i32_1 = arith.constant 0 : i32
    return %c0_i32, %c0_i32_0 : i32, i32
  }
  func.func @transform_10(%arg0: i32) -> (i32, i32) {
    %c0_i32 = arith.constant 0 : i32
    %c0_i32_0 = arith.constant 0 : i32
    %c0_i32_1 = arith.constant 0 : i32
    return %c0_i32, %c0_i32_0 : i32, i32
  }
  func.func @transform_11(%arg0: i32) -> (i32, i32) {
    %c0_i32 = arith.constant 0 : i32
    %c0_i32_0 = arith.constant 0 : i32
    %c0_i32_1 = arith.constant 0 : i32
    return %c0_i32, %c0_i32_0 : i32, i32
  }
  func.func @transform_12(%arg0: i32) -> (i32, i32) {
    %c0_i32 = arith.constant 0 : i32
    %c0_i32_0 = arith.constant 0 : i32
    %c0_i32_1 = arith.constant 0 : i32
    return %c0_i32, %c0_i32_0 : i32, i32
  }
  func.func @transform_13(%arg0: i32) -> (i32, i32) {
    %c0_i32 = arith.constant 0 : i32
    %c0_i32_0 = arith.constant 0 : i32
    %c0_i32_1 = arith.constant 0 : i32
    return %c0_i32, %c0_i32_0 : i32, i32
  }
  func.func @transform_14(%arg0: i32) -> (i32, i32) {
    %c0_i32 = arith.constant 0 : i32
    %c0_i32_0 = arith.constant 0 : i32
    %c0_i32_1 = arith.constant 0 : i32
    return %c0_i32, %c0_i32_0 : i32, i32
  }
  func.func @transform_15(%arg0: i32) -> (i32, i32) {
    %c0_i32 = arith.constant 0 : i32
    %c0_i32_0 = arith.constant 0 : i32
    %c0_i32_1 = arith.constant 0 : i32
    return %c0_i32, %c0_i32_0 : i32, i32
  }
  func.func @transform_16(%arg0: i32) -> (i32, i32, i32) {
    %c0_i32 = arith.constant 0 : i32
    %c0_i32_0 = arith.constant 0 : i32
    %c0_i32_1 = arith.constant 0 : i32
    return %arg0, %c0_i32, %c0_i32_0 : i32, i32, i32
  }
}

</mosaic_0001>

<bundles_post_ra>
// kernel: tpu_custom_call.1
= control target key start
LH: loop header
LB: loop body
LE: loop exit
PB: predicated region body
PF: predicated region fallthrough
CT: control target
= control target key end

     0   :  { %s4528_s0 = inlined_call_operand.hbm [shape: f32[2,8,32], index: 0, kind: input, shape index: {}]   ;;  %s4529_s1 = inlined_call_operand.hbm [shape: bf16[2,8,32], index: 1, kind: input, shape index: {}]   ;;  %s4530_s2 = inlined_call_operand.vmem [shape: f32[2,8,1], index: 2, kind: input, shape index: {}]   ;;  %s4531_s3 = inlined_call_operand.hbm [shape: f32[2,1,8], index: 3, kind: input, shape index: {}]   ;;  %s4532_s4 = inlined_call_operand.hbm [shape: f32[2,1,8], index: 4, kind: input, shape index: {}]   ;;  %s4533_s5 = inlined_call_operand.hbm [shape: f32[8,8], index: 5, kind: input, shape index: {}]   ;;  %s4534_s6 = inlined_call_operand.vmem [shape: bf16[4,32,32], index: 6, kind: input, shape index: {}]   ;;  %s4535_s7 = inlined_call_operand.hbm [shape: f32[4,32], index: 7, kind: input, shape index: {}]   ;;  %s4536_s8 = inlined_call_operand.hbm [shape: bf16[4,32,32], index: 8, kind: input, shape index: {}]   ;;  %s4537_s9 = inlined_call_operand.vmem [shape: f32[4,32], index: 9, kind: input, shape index: {}]   ;;  %s4538_s10 = inlined_call_operand.hbm [shape: f32[3,32], index: 10, kind: input, shape index: {}]   ;;  %s4539_s11 = inlined_call_operand.vmem [shape: f32[3,32], index: 11, kind: input, shape index: {}]   ;;  %s4540_s12 = inlined_call_operand.vmem [shape: bf16[32,64], index: 12, kind: input, shape index: {}]   ;;  %s4541_s13 = inlined_call_operand.vmem [shape: f32[1,64], index: 13, kind: input, shape index: {}]   ;;  %s4542_s14 = inlined_call_operand.vmem [shape: bf16[64,32], index: 14, kind: input, shape index: {}]   ;;  %s4543_s15 = inlined_call_operand.vmem [shape: f32[1,32], index: 15, kind: input, shape index: {}]   ;;  %s4544_s16 = inlined_call_operand.hbm [shape: f32[2,8,32], index: 16, kind: output, shape index: {}]  }
   0x1   :  { %4549 = sst [smem:[#allocation23_spill]] %s4528_s0 }
   0x2   :  { %4550 = sst [smem:[#allocation24_spill]] %s4544_s16 }
   0x3   :  { %21 = vsyncpa [#allocation3], 0 }
   0x4   :  { %22 = vsyncpa [#allocation6], 0 }
   0x5   :  { %23 = vsyncpa [#allocation9], 0 }
   0x6   :  { %24 = vsyncpa [#allocation12], 0 }
   0x7   :  { %25 = vsyncpa [#allocation15], 0 }
   0x8   :  { %26 = vsyncpa [#allocation4], 0  ;;  %s3674_s21 = smov [#allocation5]   ;;  %s3464_s25 = scalar_lea.hbm %s4529_s1, 128 }
   0x9   :  { %s44_s22 = sshll.u32 %s3674_s21, 4  ;;  %p3465_p0 = scmp.ne.s32.totalorder %s4529_s1, %s3464_s25  ;;  %s45_s22 = int_to_ptr.vmem [resolvable:$true] %s44_s22 }
   0xa   :  { %p3468_p1 = scmp.lt.u32.totalorder %s3464_s25, %s4529_s1 }
   0xc   :  { %p3470_p2 = pnand %p3468_p1, %p3465_p0 }
   0xe   :  { %3473 = shalt.err (!%p3470_p2)
}
   0xf   :  { %s3474_s30 = scalar_lea.vmem %s45_s22, 128  ;;  %p3479_p4 = scmp.lt.s32.totalorder %s45_s22, %s45_s22 }
  0x10   :  { %p3475_p3 = scmp.ne.s32.totalorder %s45_s22, %s3474_s30  ;;  %p3480_p5 = scmp.lt.s32.totalorder %s3474_s30, %s3474_s30 }
  0x12   :  { %p3481_p6 = por %p3480_p5, %p3479_p4 }
  0x14   :  { %p3482_p7 = pnand %p3481_p6, %p3475_p3 }
  0x16   :  { %3485 = shalt.err (!%p3482_p7)
}
  0x17   :  { %s4547_s0 = smov 64   ;;  %s4548_s17 = smov 4  }
  0x18   :  { %50 = dma.hbm_to_vmem [thread:$0]  %s4529_s1, 128, %s45_s22, [#allocation6], %s4547_s0, %s4547_s0, %s4548_s17  }
  0x19   :  { %s3677_s20 = smov [#allocation8]   ;;  %s3678_s23 = smov [#allocation11]  }
  0x1a   :  { %s70_s21 = sshll.u32 %s3677_s20, 4  ;;  %s95_s24 = sshll.u32 %s3678_s23, 4  ;;  %s71_s21 = int_to_ptr.vmem [resolvable:$true] %s70_s21  ;;  %s96_s24 = int_to_ptr.vmem [resolvable:$true] %s95_s24 }
  0x1b   :  { %s3486_s27 = scalar_lea.hbm %s4532_s4, 32 }
  0x1c   :  { %p3487_p8 = scmp.ne.s32.totalorder %s4532_s4, %s3486_s27  ;;  %p3490_p9 = scmp.lt.u32.totalorder %s3486_s27, %s4532_s4 }
  0x1e   :  { %p3492_p10 = pnand %p3490_p9, %p3487_p8 }
  0x20   :  { %3495 = shalt.err (!%p3492_p10)
}
  0x21   :  { %s3496_s1 = scalar_lea.vmem %s71_s21, 32  ;;  %p3501_p12 = scmp.lt.s32.totalorder %s71_s21, %s71_s21 }
  0x22   :  { %p3497_p11 = scmp.ne.s32.totalorder %s71_s21, %s3496_s1  ;;  %p3502_p13 = scmp.lt.s32.totalorder %s3496_s1, %s3496_s1 }
  0x24   :  { %p3503_p0 = por %p3502_p13, %p3501_p12 }
  0x26   :  { %p3504_p1 = pnand %p3503_p0, %p3497_p11 }
  0x28   :  { %3507 = shalt.err (!%p3504_p1)
}
  0x29   :  { %s3679_s22 = smov 16   ;;  %s3680_s18 = smov 1  }
  0x2a   :  { %76 = dma.hbm_to_vmem [thread:$0]  %s4532_s4, 32, %s71_s21, [#allocation9], %s3679_s22, %s3679_s22, %s3680_s18  }
  0x2b   :  { %s3508_s25 = scalar_lea.hbm %s4535_s7, 64 }
  0x2c   :  { %p3509_p2 = scmp.ne.s32.totalorder %s4535_s7, %s3508_s25  ;;  %p3512_p3 = scmp.lt.u32.totalorder %s3508_s25, %s4535_s7 }
  0x2e   :  { %p3514_p4 = pnand %p3512_p3, %p3509_p2 }
  0x30   :  { %3517 = shalt.err (!%p3514_p4)
}
  0x31   :  { %s3518_s30 = scalar_lea.vmem %s96_s24, 64  ;;  %p3523_p6 = scmp.lt.s32.totalorder %s96_s24, %s96_s24 }
  0x32   :  { %p3519_p5 = scmp.ne.s32.totalorder %s96_s24, %s3518_s30  ;;  %p3524_p7 = scmp.lt.s32.totalorder %s3518_s30, %s3518_s30 }
  0x34   :  { %p3525_p8 = por %p3524_p7, %p3523_p6 }
  0x36   :  { %p3526_p9 = pnand %p3525_p8, %p3519_p5 }
  0x38   :  { %3529 = shalt.err (!%p3526_p9)
}
  0x39   :  { %98 = dma.hbm_to_vmem [thread:$0]  %s4535_s7, 64, %s96_s24, [#allocation12]  }
  0x3a   :  { %s3681_s1 = smov [#allocation2]   ;;  %s4551_s23 = sld [smem:[#allocation23_spill]] }
  0x3b   :  { %s32_s19 = sshll.u32 %s3681_s1, 4  ;;  %s33_s19 = int_to_ptr.vmem [resolvable:$true] %s32_s19 }
  0x40   :  { %s3530_s25 = scalar_lea.hbm %s4551_s23, 256 }
  0x41   :  { %p3531_p10 = scmp.ne.s32.totalorder %s4551_s23, %s3530_s25  ;;  %p3534_p11 = scmp.lt.u32.totalorder %s3530_s25, %s4551_s23 }
  0x43   :  { %p3536_p12 = pnand %p3534_p11, %p3531_p10 }
  0x45   :  { %3539 = shalt.err (!%p3536_p12)
}
  0x46   :  { %s3540_s30 = scalar_lea.vmem %s33_s19, 256  ;;  %p3545_p0 = scmp.lt.s32.totalorder %s33_s19, %s33_s19 }
  0x47   :  { %p3541_p13 = scmp.ne.s32.totalorder %s33_s19, %s3540_s30  ;;  %p3546_p1 = scmp.lt.s32.totalorder %s3540_s30, %s3540_s30 }
  0x49   :  { %p3547_p2 = por %p3546_p1, %p3545_p0 }
  0x4b   :  { %p3548_p3 = pnand %p3547_p2, %p3541_p13 }
  0x4d   :  { %3551 = shalt.err (!%p3548_p3)
}
  0x4e   :  { %s3682_s7 = smov 128   ;;  %s3683_s24 = smov 8  }
  0x4f   :  { %38 = dma.hbm_to_vmem [thread:$0]  %s4551_s23, 256, %s33_s19, [#allocation3], %s3682_s7, %s3682_s7, %s3683_s24  }
  0x50   :  { %s3684_s1 = smov [#allocation7]   ;;  %s3685_s16 = smov [#allocation10]  }
  0x51   :  { %s58_s20 = sshll.u32 %s3684_s1, 4  ;;  %s83_s25 = sshll.u32 %s3685_s16, 4  ;;  %s59_s20 = int_to_ptr.vmem [resolvable:$true] %s58_s20  ;;  %s84_s25 = int_to_ptr.vmem [resolvable:$true] %s83_s25 }
  0x52   :  { %s3552_s28 = scalar_lea.hbm %s4531_s3, 32 }
  0x53   :  { %p3553_p4 = scmp.ne.s32.totalorder %s4531_s3, %s3552_s28  ;;  %p3556_p5 = scmp.lt.u32.totalorder %s3552_s28, %s4531_s3 }
  0x55   :  { %p3558_p6 = pnand %p3556_p5, %p3553_p4 }
  0x57   :  { %3561 = shalt.err (!%p3558_p6)
}
  0x58   :  { %s3562_s19 = scalar_lea.vmem %s59_s20, 32  ;;  %p3567_p8 = scmp.lt.s32.totalorder %s59_s20, %s59_s20 }
  0x59   :  { %p3563_p7 = scmp.ne.s32.totalorder %s59_s20, %s3562_s19  ;;  %p3568_p9 = scmp.lt.s32.totalorder %s3562_s19, %s3562_s19 }
  0x5b   :  { %p3569_p10 = por %p3568_p9, %p3567_p8 }
  0x5d   :  { %p3570_p11 = pnand %p3569_p10, %p3563_p7 }
  0x5f   :  { %3573 = shalt.err (!%p3570_p11)
}
  0x60   :  { %64 = dma.hbm_to_vmem [thread:$0]  %s4531_s3, 32, %s59_s20, [#allocation6], %s3679_s22, %s3679_s22, %s3680_s18  }
  0x61   :  { %s3574_s0 = scalar_lea.hbm %s4533_s5, 128 }
  0x62   :  { %p3575_p12 = scmp.ne.s32.totalorder %s4533_s5, %s3574_s0  ;;  %p3578_p13 = scmp.lt.u32.totalorder %s3574_s0, %s4533_s5 }
  0x64   :  { %p3580_p0 = pnand %p3578_p13, %p3575_p12 }
  0x66   :  { %3583 = shalt.err (!%p3580_p0)
}
  0x67   :  { %s3584_s28 = scalar_lea.vmem %s84_s25, 128  ;;  %p3589_p2 = scmp.lt.s32.totalorder %s84_s25, %s84_s25 }
  0x68   :  { %p3585_p1 = scmp.ne.s32.totalorder %s84_s25, %s3584_s28  ;;  %p3590_p3 = scmp.lt.s32.totalorder %s3584_s28, %s3584_s28 }
  0x6a   :  { %p3591_p4 = por %p3590_p3, %p3589_p2 }
  0x6c   :  { %p3592_p5 = pnand %p3591_p4, %p3585_p1 }
  0x6e   :  { %3595 = shalt.err (!%p3592_p5)
}
  0x6f   :  { %86 = dma.hbm_to_vmem [thread:$0]  %s4533_s5, 128, %s84_s25, [#allocation9]  }
  0x70   :  { %s3686_s20 = smov [#allocation13]   ;;  %s3687_s30 = smov [#allocation14]  }
  0x71   :  { %s104_s29 = sshll.u32 %s3686_s20, 4  ;;  %s119_s19 = sshll.u32 %s3687_s30, 4  ;;  %s105_s29 = int_to_ptr.vmem [resolvable:$true] %s104_s29  ;;  %s120_s19 = int_to_ptr.vmem [resolvable:$true] %s119_s19 }
  0x72   :  { %s3596_s21 = scalar_lea.hbm %s4536_s8, 1024 }
  0x73   :  { %p3597_p6 = scmp.ne.s32.totalorder %s4536_s8, %s3596_s21  ;;  %p3600_p7 = scmp.lt.u32.totalorder %s3596_s21, %s4536_s8 }
  0x75   :  { %p3602_p8 = pnand %p3600_p7, %p3597_p6 }
  0x77   :  { %3605 = shalt.err (!%p3602_p8)
}
  0x78   :  { %s3606_s5 = scalar_lea.vmem %s105_s29, 1024  ;;  %p3611_p10 = scmp.lt.s32.totalorder %s105_s29, %s105_s29 }
  0x79   :  { %p3607_p9 = scmp.ne.s32.totalorder %s105_s29, %s3606_s5  ;;  %p3612_p11 = scmp.lt.s32.totalorder %s3606_s5, %s3606_s5 }
  0x7b   :  { %p3613_p12 = por %p3612_p11, %p3611_p10 }
  0x7d   :  { %p3614_p13 = pnand %p3613_p12, %p3607_p9 }
  0x7f   :  { %3617 = shalt.err (!%p3614_p13)
}
  0x80   :  { %s4552_s25 = smov 4   ;;  %s4553_s26 = smov 64  }
  0x81   :  { %110 = dma.hbm_to_vmem [thread:$0]  %s4536_s8, 1024, %s105_s29, [#allocation12], %s4553_s26, %s4553_s26, %s4552_s25  }
  0x82   :  { %s3618_s20 = scalar_lea.hbm %s4538_s10, 64 }
  0x83   :  { %p3619_p0 = scmp.ne.s32.totalorder %s4538_s10, %s3618_s20  ;;  %p3622_p1 = scmp.lt.u32.totalorder %s3618_s20, %s4538_s10 }
  0x85   :  { %p3624_p2 = pnand %p3622_p1, %p3619_p0 }
  0x87   :  { %3627 = shalt.err (!%p3624_p2)
}
  0x88   :  { %s3628_s1 = scalar_lea.vmem %s120_s19, 64  ;;  %p3633_p4 = scmp.lt.s32.totalorder %s120_s19, %s120_s19 }
  0x89   :  { %p3629_p3 = scmp.ne.s32.totalorder %s120_s19, %s3628_s1  ;;  %p3634_p5 = scmp.lt.s32.totalorder %s3628_s1, %s3628_s1 }
  0x8b   :  { %p3635_p6 = por %p3634_p5, %p3633_p4 }
  0x8d   :  { %p3636_p7 = pnand %p3635_p6, %p3629_p3 }
  0x8f   :  { %3639 = shalt.err (!%p3636_p7)
}
  0x90   :  { %122 = dma.hbm_to_vmem [thread:$0]  %s4538_s10, 64, %s120_s19, [#allocation15]  }
  0x91   :  { %3662 = dma.done.wait [#allocation3], 256  }
  0x92   :  { %3663 = vsyncadd [#allocation3], 4294967040 }
  0x93   :  { %3664 = dma.done.wait [#allocation6], 160  }
  0x94   :  { %3665 = vsyncadd [#allocation6], 4294967136 }
  0x95   :  { %3666 = dma.done.wait [#allocation9], 160  }
  0x96   :  { %3667 = vsyncadd [#allocation9], 4294967136 }
  0x97   :  { %3668 = dma.done.wait [#allocation12], 1088  }
  0x98   :  { %3669 = vsyncadd [#allocation12], 4294966208 }
  0x99   :  { %3670 = dma.done.wait [#allocation15], 64  }
  0x9a   :  { %3671 = vsyncadd [#allocation15], 4294967232  ;;  %v3688_v0 = vmov 0.0   ;;  %vm3689_vm0 = vmmov 0   ;;  %v3365_v1 = vld [vmem:[%s4534_s6] sm:$0xff]   ;;  %v3366_v2 = vld [vmem:[%s4534_s6 + $0x10] sm:$0xff]   ;;  %v174_v10 = vlaneseq }
  0x9b   :  { %3065 = vmatprep.subr.bf16.mxu0 %v3688_v0  ;;  %3073 = vmatprep.subr.bf16.mxu1 %v3688_v0  ;;  %v3367_v3 = vld [vmem:[%s4534_s6 + $0x8] sm:$0xff]   ;;  %v3368_v4 = vld [vmem:[%s4534_s6 + $0x18] sm:$0xff]   ;;  %v3912_v5 = vld [vmem:[#allocation2] sm:$0xff]  ;;  %vm226_vm1 = vcmask 261120   ;;  %vm432_vm2 = vcmask 64512   ;;  %s3690_s20 = smov 120  }
  0x9c   :  { %3069 = vmatprep.mubr.msk.bf16.mxu0 %vm3689_vm0, %v3688_v0  ;;  %3077 = vmatprep.mubr.msk.bf16.mxu1 %vm3689_vm0, %v3688_v0  ;;  %v3914_v6 = vld [vmem:[#allocation2 + $0x8] sm:$0xff]  ;;  %v3369_v8 = vld [vmem:[%s4534_s6 + $0x20] sm:$0xff]   ;;  %v3937_v11 = vshrl.u32 %v174_v10, 7  ;;  %s3691_s30 = smov 112   ;;  %s3692_s23 = smov 104   ;;  %v3693_v36 = vmov 0  }
  0x9d   :  { %3066 = vmatpush3.bf16.msra.mxu0 %v3365_v1  ;;  %3074 = vmatpush3.bf16.msra.mxu1 %v3366_v2  ;;  %v192_v7 = vpack.c.bf16 %v3914_v6, %v3912_v5  ;;  %v3370_v9 = vld [vmem:[%s4534_s6 + $0x28] sm:$0xff]   ;;  %v3942_v13 = vld [vmem:[#allocation11] sm:$0xf]  ;;  %v166_v2 = vld [vmem:[#allocation7] sm:$0x1]  ;;  %vm912_vm4 = vcmask 1043456  }
  0x9e   :  { %3067 = vmatprep.subr.bf16.mxu0 %v3688_v0  ;;  %3075 = vmatprep.subr.bf16.mxu1 %v3688_v0  ;;  %v3940_v12 = vsub.s32 0, %v3937_v11  ;;  %v3945_v14 = vsub.s32 1, %v3937_v11  ;;  %v3971_v37 = vsub.s32 2, %v3937_v11  ;;  %vm168_vm3 = vcmp.gt.f32.partialorder %v166_v2, 0.5 }
  0x9f   :  { %3364 = vset.pattern.permute.xlu1 %v3693_v36  ;;  %3363 = vset.pattern.permute.xlu0 %v3693_v36  ;;  %vm1301_vm11 = vcmask 195584   ;;  %vm1298_vm12 = vcmask 130048  }
  0xa0   :  { %v213_v15 = vrot.slane %v3942_v13, %v3940_v12  ;;  %v274_v17 = vrot.slane %v3942_v13, %v3945_v14  ;;  %v331_v38 = vrot.slane %v3942_v13, %v3971_v37 }
  0xa1   :  { %3068 = vmatpush3.bf16.msra.mxu0 %v3367_v3  ;;  %3076 = vmatpush3.bf16.msra.mxu1 %v3368_v4  ;;  %v172_v3 = vsel %vm168_vm3, 1, %v3693_v36 }
  0xa2   :  { %3081 = vmatprep.subr.bf16.mxu0 %v3688_v0  ;;  %3089 = vmatprep.subr.bf16.mxu1 %v3688_v0 }
  0xa4   :  { %3070 = vmatmul.mubr.msk.bf16.vlgmr.msra.gmra.mrb[0].mxu0 %vm226_vm1, %v192_v7  ;;  %3078 = vmatmul.mubr.msk.bf16.vlgmr.msra.gmra.mrb[0].mxu1 %vm226_vm1, %v192_v7 }
  0xa5   :  { %3085 = vmatprep.mubr.msk.bf16.mxu0 %vm3689_vm0, %v3688_v0  ;;  %3091 = vmatprep.mubr.msk.bf16.mxu1 %vm3689_vm0, %v3688_v0 }
  0xa6   :  { %3082 = vmatpush3.bf16.msra.mxu0 %v3369_v8  ;;  %v164_v8 = vld [vmem:[#allocation10] sm:$0xff] }
  0xa7   :  { %3083 = vmatprep.subr.bf16.mxu0 %v3688_v0  ;;  %vm165_vm5 = vcmp.gt.f32.partialorder %v164_v8, 0.5 }
  0xaa   :  { %3084 = vmatpush3.bf16.msra.mxu0 %v3370_v9 }
  0xab   :  { %3095 = vmatprep.subr.bf16.mxu0 %v3688_v0 }
  0xad   :  { %3086 = vmatmul.mubr.msk.bf16.vlgmr.msra.gmra.mrb[4].mxu0 %vm226_vm1, %v192_v7  ;;  %v177_v7 = vrot.slane %v172_v3, %v3940_v12 }
  0xae   :  { %3097 = vmatprep.mubr.msk.bf16.mxu0 %vm3689_vm0, %v3688_v0 }
  0xaf   :  { %vm182_vm6 = vcmp.eq.s32.totalorder %v177_v7, 1 }
  0xb0   :  { %vm4018_vm7 = vmand %vm165_vm5, %vm182_vm6 }
 0x177   :  { %v264_v16 = vpop.f32.mrb[0].mxu0  ;;  %v321_v19 = vpop.f32.mrb[0].mxu1 }
 0x178   :  { %v265_v18 = vadd.f32 %v264_v16, %v213_v15  ;;  %v3071_v20 = vpop.f32.mrb[1].mxu0  ;;  %v3079_v21 = vpop.f32.mrb[1].mxu1  ;;  %v322_v27 = vadd.f32 %v321_v19, %v274_v17 }
 0x179   :  { %v267_v22 = vpop.f32.mrb[2].mxu0  ;;  %v324_v25 = vpop.f32.mrb[2].mxu1  ;;  %v167_v20 = vld [vmem:[#allocation7 + $0x1] sm:$0x1] }
 0x17a   :  { %v385_v23 = vmul.f32 0.35355338, %v265_v18  ;;  %v268_v24 = vadd.f32 %v267_v22, %v213_v15  ;;  %v3072_v26 = vpop.f32.mrb[3].mxu0  ;;  %v325_v28 = vadd.f32 %v324_v25, %v274_v17  ;;  %v3080_v29 = vpop.f32.mrb[3].mxu1  ;;  %vm169_vm8 = vcmp.gt.f32.partialorder %v167_v20, 0.5 }
 0x17b   :  { %v173_v22 = vsel %vm169_vm8, 1, %v3693_v36 }
 0x17c   :  { %v386_v30 = vmul.f32 0.35355338, %v268_v24  ;;  %v402_v31 = vpack.c.bf16 %v325_v28, %v322_v27  ;;  %v181_v28 = vrot.slane %v173_v22, %v3940_v12 }
 0x17e   :  { %v387_v32 = vpack.c.bf16 %v386_v30, %v385_v23  ;;  %404 = vrot.lane.b32.xlu0 %v402_v31, %s3690_s20  ;;  %v437_v33 = vsel %vm432_vm2, %v402_v31, 0  ;;  %v410_v34 = vrot.slane %v402_v31, 4  ;;  %vm183_vm9 = vcmp.eq.s32.totalorder %v181_v28, 1 }
 0x17f   :  { %3090 = vmatpush3.bf16.xpose.msra.mxu1 %v437_v33  ;;  %vm4040_vm10 = vmand %vm165_vm5, %vm183_vm9 }
 0x180   :  { %389 = vrot.lane.b32.xlu1 %v387_v32, %s3690_s20  ;;  %3101 = vmatprep.subr.bf16.mxu1 %v3688_v0  ;;  %v395_v35 = vrot.slane %v387_v32, 4  ;;  %v378_v39 = vpop.f32.mrb[4].mxu0  ;;  %v621_v55 = vsel %vm432_vm2, %v410_v34, 0 }
 0x181   :  { %v379_v41 = vadd.f32 %v378_v39, %v331_v38  ;;  %v3087_v42 = vpop.f32.mrb[5].mxu0 }
 0x182   :  { %406 = vrot.lane.b32.xlu0 %v402_v31, %s3691_s30  ;;  %v381_v45 = vpop.f32.mrb[6].mxu0 }
 0x183   :  { %v382_v46 = vadd.f32 %v381_v45, %v331_v38  ;;  %v3088_v47 = vpop.f32.mrb[7].mxu0 }
 0x184   :  { %408 = vrot.lane.b32.xlu1 %v402_v31, %s3692_s23 }
 0x185   :  { %v3977_v49 = vpack.c.bf16 %v382_v46, %v379_v41 }
 0x186   :  { %391 = vrot.lane.b32.xlu0 %v387_v32, %s3691_s30  ;;  %3092 = vmatmul.mubr.msk.bf16.vlgmr.msra.gmra.mrb[4].mxu1 %vm432_vm2, %v387_v32 }
 0x187   :  { %3103 = vmatprep.mubr.msk.bf16.mxu1 %vm3689_vm0, %v3688_v0  ;;  %v914_v4 = vsel %vm912_vm4, %v3977_v49, 0 }
 0x188   :  { %393 = vrot.lane.b32.xlu1 %v387_v32, %s3692_s23 }
 0x18a   :  { %411 = vrot.lane.b32.xlu0 %v410_v34, %s3690_s20 }
 0x18c   :  { %413 = vrot.lane.b32.xlu1 %v410_v34, %s3691_s30 }
 0x18e   :  { %396 = vrot.lane.b32.xlu0 %v395_v35, %s3690_s20 }
 0x190   :  { %415 = vrot.lane.b32.xlu1 %v410_v34, %s3692_s23 }
 0x192   :  { %398 = vrot.lane.b32.xlu0 %v395_v35, %s3691_s30 }
 0x194   :  { %400 = vrot.lane.b32.xlu1 %v395_v35, %s3692_s23 }
 0x1f0   :  { %v405_v40 = vpop.permute.xlu0 %404 }
 0x1f1   :  { %v483_v43 = vsel %vm432_vm2, %v405_v40, 0 }
 0x1f2   :  { %v390_v44 = vpop.permute.xlu1 %389  ;;  %3096 = vmatpush3.bf16.xpose.msra.mxu0 %v483_v43 }
 0x1f3   :  { %3107 = vmatprep.subr.bf16.mxu0 %v3688_v0 }
 0x1f4   :  { %v407_v48 = vpop.permute.xlu0 %406 }
 0x1f5   :  { %v529_v50 = vsel %vm432_vm2, %v407_v48, 0 }
 0x1f6   :  { %v409_v51 = vpop.permute.xlu1 %408  ;;  %3102 = vmatpush3.bf16.xpose.msra.mxu1 %v529_v50 }
 0x1f7   :  { %3113 = vmatprep.subr.bf16.mxu1 %v3688_v0  ;;  %v575_v53 = vsel %vm432_vm2, %v409_v51, 0 }
 0x1f8   :  { %v392_v52 = vpop.permute.xlu0 %391 }
 0x1f9   :  { %3098 = vmatmul.mubr.msk.bf16.vlgmr.msra.gmra.mrb[8].mxu0 %vm432_vm2, %v390_v44 }
 0x1fa   :  { %3108 = vmatpush3.bf16.xpose.msra.mxu0 %v575_v53  ;;  %v394_v54 = vpop.permute.xlu1 %393  ;;  %3109 = vmatprep.mubr.msk.bf16.mxu0 %vm3689_vm0, %v3688_v0 }
 0x1fb   :  { %3119 = vmatprep.subr.bf16.mxu0 %v3688_v0 }
 0x1fc   :  { %v412_v56 = vpop.permute.xlu0 %411 }
 0x1fd   :  { %3104 = vmatmul.mubr.msk.bf16.vlgmr.msra.gmra.mrb[8].mxu1 %vm432_vm2, %v392_v52  ;;  %v667_v58 = vsel %vm432_vm2, %v412_v56, 0 }
 0x1fe   :  { %3114 = vmatpush3.bf16.xpose.msra.mxu1 %v621_v55  ;;  %3115 = vmatprep.mubr.msk.bf16.mxu1 %vm3689_vm0, %v3688_v0  ;;  %v414_v57 = vpop.permute.xlu1 %413 }
 0x1ff   :  { %3125 = vmatprep.subr.bf16.mxu1 %v3688_v0  ;;  %v713_v59 = vsel %vm432_vm2, %v414_v57, 0 }
 0x200   :  { %v397_v60 = vpop.permute.xlu0 %396 }
 0x201   :  { %3110 = vmatmul.mubr.msk.bf16.vlgmr.msra.gmra.mrb[12].mxu0 %vm432_vm2, %v394_v54 }
 0x202   :  { %3120 = vmatpush3.bf16.xpose.msra.mxu0 %v667_v58  ;;  %3121 = vmatprep.mubr.msk.bf16.mxu0 %vm3689_vm0, %v3688_v0  ;;  %v416_v61 = vpop.permute.xlu1 %415 }
 0x203   :  { %3131 = vmatprep.subr.bf16.mxu0 %v3688_v0  ;;  %v759_v62 = vsel %vm432_vm2, %v416_v61, 0 }
 0x204   :  { %v399_v63 = vpop.permute.xlu0 %398 }
 0x205   :  { %3116 = vmatmul.mubr.msk.bf16.vlgmr.msra.gmra.mrb[12].mxu1 %vm432_vm2, %v395_v35 }
 0x206   :  { %3126 = vmatpush3.bf16.xpose.msra.mxu1 %v713_v59  ;;  %3127 = vmatprep.mubr.msk.bf16.mxu1 %vm3689_vm0, %v3688_v0  ;;  %v401_v1 = vpop.permute.xlu1 %400 }
 0x207   :  { %3137 = vmatprep.subr.bf16.mxu1 %v3688_v0 }
 0x209   :  { %3122 = vmatmul.mubr.msk.bf16.vlgmr.msra.gmra.mrb[16].mxu0 %vm432_vm2, %v397_v60 }
 0x20a   :  { %3132 = vmatpush3.bf16.xpose.msra.mxu0 %v759_v62  ;;  %3133 = vmatprep.mubr.msk.bf16.mxu0 %vm3689_vm0, %v3688_v0 }
 0x20b   :  { %3143 = vmatprep.subr.bf16.mxu0 %v3688_v0 }
 0x20d   :  { %3128 = vmatmul.mubr.msk.bf16.vlgmr.msra.gmra.mrb[16].mxu1 %vm432_vm2, %v399_v63 }
 0x20e   :  { %3139 = vmatprep.mubr.msk.bf16.mxu1 %vm3689_vm0, %v3688_v0  ;;  %3138 = vmatpush3.bf16.msra.mxu1 %v914_v4 }
 0x20f   :  { %3149 = vmatprep.subr.bf16.mxu1 %v3688_v0 }
 0x211   :  { %3134 = vmatmul.mubr.msk.bf16.vlgmr.msra.gmra.mrb[20].mxu0 %vm432_vm2, %v401_v1 }
 0x212   :  { %3145 = vmatprep.mubr.msk.bf16.mxu0 %vm3689_vm0, %v3688_v0 }
 0x259   :  { %v473_v10 = vpop.f32.mrb[4].mxu1 }
 0x25a   :  { %v4024_v15 = vsel %vm4018_vm7, %v473_v10, -1e+09  ;;  %v3093_v16 = vpop.f32.mrb[5].mxu1 }
 0x25b   :  { %v476_v17 = vpop.f32.mrb[6].mxu1  ;;  %v813_v18 = vsel %vm432_vm2, %v4024_v15, -inf }
 0x25c   :  { %v3094_v19 = vpop.f32.mrb[7].mxu1  ;;  %814 = vmax.xlane.f32.xlu0 %v813_v18 }
 0x2cc   :  { %v519_v21 = vpop.f32.mrb[8].mxu0 }
 0x2cd   :  { %v806_v23 = vsel %vm4018_vm7, %v519_v21, -1e+09  ;;  %v3099_v24 = vpop.f32.mrb[9].mxu0 }
 0x2ce   :  { %v522_v25 = vpop.f32.mrb[10].mxu0  ;;  %v816_v26 = vsel %vm432_vm2, %v806_v23, -inf }
 0x2cf   :  { %817 = vmax.xlane.f32.xlu1 %v816_v26  ;;  %v3100_v27 = vpop.f32.mrb[11].mxu0 }
 0x2d0   :  { %v565_v29 = vpop.f32.mrb[8].mxu1 }
 0x2d1   :  { %v807_v30 = vsel %vm4018_vm7, %v565_v29, -1e+09  ;;  %v3105_v31 = vpop.f32.mrb[9].mxu1 }
 0x2d2   :  { %v568_v32 = vpop.f32.mrb[10].mxu1  ;;  %v819_v33 = vsel %vm432_vm2, %v807_v30, -inf }
 0x2d3   :  { %v3106_v34 = vpop.f32.mrb[11].mxu1  ;;  %820 = vmax.xlane.f32.xlu0 %v819_v33 }
 0x2d4   :  { %v611_v35 = vpop.f32.mrb[12].mxu0 }
 0x2d5   :  { %v808_v38 = vsel %vm4018_vm7, %v611_v35, -1e+09  ;;  %v3111_v39 = vpop.f32.mrb[13].mxu0 }
 0x2d6   :  { %v614_v40 = vpop.f32.mrb[14].mxu0  ;;  %v822_v41 = vsel %vm432_vm2, %v808_v38, -inf }
 0x2d7   :  { %823 = vmax.xlane.f32.xlu0 %v822_v41  ;;  %v3112_v43 = vpop.f32.mrb[15].mxu0 }
 0x2d8   :  { %v657_v44 = vpop.f32.mrb[12].mxu1 }
 0x2d9   :  { %v4046_v45 = vsel %vm4040_vm10, %v657_v44, -1e+09  ;;  %v3117_v46 = vpop.f32.mrb[13].mxu1 }
 0x2da   :  { %v660_v47 = vpop.f32.mrb[14].mxu1  ;;  %v825_v48 = vsel %vm432_vm2, %v4046_v45, -inf }
 0x2db   :  { %v3118_v50 = vpop.f32.mrb[15].mxu1  ;;  %826 = vmax.xlane.f32.xlu1 %v825_v48 }
 0x2dc   :  { %v703_v51 = vpop.f32.mrb[16].mxu0 }
 0x2dd   :  { %v4052_v52 = vsel %vm4040_vm10, %v703_v51, -1e+09  ;;  %v3123_v53 = vpop.f32.mrb[17].mxu0 }
 0x2de   :  { %v706_v54 = vpop.f32.mrb[18].mxu0  ;;  %v828_v55 = vsel %vm432_vm2, %v4052_v52, -inf }
 0x2df   :  { %829 = vmax.xlane.f32.xlu0 %v828_v55  ;;  %v3124_v56 = vpop.f32.mrb[19].mxu0 }
 0x2e0   :  { %v749_v57 = vpop.f32.mrb[16].mxu1 }
 0x2e1   :  { %v811_v58 = vsel %vm4040_vm10, %v749_v57, -1e+09  ;;  %v3129_v59 = vpop.f32.mrb[17].mxu1 }
 0x2e2   :  { %v752_v60 = vpop.f32.mrb[18].mxu1  ;;  %v831_v61 = vsel %vm432_vm2, %v811_v58, -inf }
 0x2e3   :  { %v3130_v62 = vpop.f32.mrb[19].mxu1  ;;  %832 = vmax.xlane.f32.xlu1 %v831_v61 }
 0x2e4   :  { %v795_v63 = vpop.f32.mrb[20].mxu0 }
 0x2e5   :  { %v812_v1 = vsel %vm4040_vm10, %v795_v63, -1e+09  ;;  %v3135_v2 = vpop.f32.mrb[21].mxu0 }
 0x2e6   :  { %v798_v3 = vpop.f32.mrb[22].mxu0  ;;  %v834_v4 = vsel %vm432_vm2, %v812_v1, -inf }
 0x2e7   :  { %835 = vmax.xlane.f32.xlu0 %v834_v4  ;;  %v3136_v7 = vpop.f32.mrb[23].mxu0 }
 0x2e9   :  { %v815_v8 = vpop.xlane.xlu0 %814 }
 0x2ea   :  { %v837_v9 = vsub.f32 %v4024_v15, %v815_v8 }
 0x2ec   :  { %v845_v10 = vmul.f32 1.442695, %v837_v9 }
 0x2ee   :  { %3388 = vpow2.f32 %v845_v10 }
 0x2f4   :  { %419 = vrot.lane.b32.xlu1 %v3977_v49, %s3690_s20 }
 0x2f8   :  { %v4065_v16 = vpop.eup %3388 }
 0x2f9   :  { %v861_v17 = vsel %vm432_vm2, %v4065_v16, 0.0 }
 0x318   :  { %862 = vadd.xlane.f32.xlu1 %v861_v17 }
 0x35c   :  { %v818_v18 = vpop.xlane.xlu1 %817 }
 0x35d   :  { %v838_v19 = vsub.f32 %v806_v23, %v818_v18 }
 0x35f   :  { %v847_v20 = vmul.f32 1.442695, %v838_v19 }
 0x360   :  { %v821_v21 = vpop.xlane.xlu0 %820 }
 0x361   :  { %3390 = vpow2.f32 %v847_v20  ;;  %v839_v22 = vsub.f32 %v807_v30, %v821_v21 }
 0x363   :  { %v849_v24 = vmul.f32 1.442695, %v839_v22 }
 0x364   :  { %v824_v25 = vpop.xlane.xlu0 %823 }
 0x365   :  { %3392 = vpow2.f32 %v849_v24  ;;  %v840_v26 = vsub.f32 %v808_v38, %v824_v25  ;;  %v4083_v38 = vrot.slane %v3977_v49, 4 }
 0x367   :  { %v851_v27 = vmul.f32 1.442695, %v840_v26  ;;  %v1098_v20 = vsel %vm912_vm4, %v4083_v38, 0 }
 0x368   :  { %v827_v28 = vpop.xlane.xlu1 %826 }
 0x369   :  { %3394 = vpow2.f32 %v851_v27  ;;  %v841_v40 = vsub.f32 %v4046_v45, %v827_v28 }
 0x36b   :  { %v3391_v15 = vpop.eup %3390  ;;  %v853_v43 = vmul.f32 1.442695, %v841_v40 }
 0x36c   :  { %v864_v29 = vsel %vm432_vm2, %v3391_v15, 0.0  ;;  %v830_v39 = vpop.xlane.xlu0 %829 }
 0x36d   :  { %865 = vadd.xlane.f32.xlu0 %v864_v29  ;;  %v842_v41 = vsub.f32 %v4052_v52, %v830_v39  ;;  %3396 = vpow2.f32 %v853_v43 }
 0x36f   :  { %v4070_v31 = vpop.eup %3392  ;;  %v855_v46 = vmul.f32 1.442695, %v842_v41 }
 0x370   :  { %v833_v32 = vpop.xlane.xlu1 %832  ;;  %v867_v23 = vsel %vm432_vm2, %v4070_v31, 0.0 }
 0x371   :  { %868 = vadd.xlane.f32.xlu1 %v867_v23  ;;  %v843_v44 = vsub.f32 %v811_v58, %v833_v32  ;;  %3398 = vpow2.f32 %v855_v46 }
 0x373   :  { %v4074_v33 = vpop.eup %3394  ;;  %v857_v48 = vmul.f32 1.442695, %v843_v44 }
 0x374   :  { %v420_v30 = vpop.permute.xlu1 %419  ;;  %v870_v34 = vsel %vm432_vm2, %v4074_v33, 0.0  ;;  %v836_v42 = vpop.xlane.xlu0 %835 }
 0x375   :  { %v960_v35 = vsel %vm912_vm4, %v420_v30, 0  ;;  %871 = vadd.xlane.f32.xlu0 %v870_v34  ;;  %v844_v47 = vsub.f32 %v812_v1, %v836_v42  ;;  %3400 = vpow2.f32 %v857_v48 }
 0x376   :  { %3144 = vmatpush3.bf16.msra.mxu0 %v960_v35 }
 0x377   :  { %3155 = vmatprep.subr.bf16.mxu0 %v3688_v0  ;;  %v859_v50 = vmul.f32 1.442695, %v844_v47  ;;  %v4091_v51 = vpop.eup %3396 }
 0x378   :  { %v873_v52 = vsel %vm432_vm2, %v4091_v51, 0.0 }
 0x379   :  { %3402 = vpow2.f32 %v859_v50 }
 0x382   :  { %423 = vrot.lane.b32.xlu1 %v3977_v49, %s3692_s23 }
 0x386   :  { %426 = vrot.lane.b32.xlu1 %v4083_v38, %s3690_s20 }
 0x38b   :  { %421 = vrot.lane.b32.xlu0 %v3977_v49, %s3691_s30  ;;  %v4093_v49 = vpop.eup %3398 }
 0x38c   :  { %v4095_v45 = vpop.eup %3400  ;;  %v876_v54 = vsel %vm432_vm2, %v4093_v49, 0.0 }
 0x38d   :  { %v4101_v55 = vpop.eup %3402  ;;  %v879_v56 = vsel %vm432_vm2, %v4095_v45, 0.0 }
 0x38e   :  { %v882_v57 = vsel %vm432_vm2, %v4101_v55, 0.0 }
 0x3a5   :  { %v863_v53 = vpop.xlane.xlu1 %862 }
 0x3a6   :  { %3404 = vrcp.f32 %v863_v53 }
 0x3aa   :  { %874 = vadd.xlane.f32.xlu1 %v873_v52  ;;  %877 = vadd.xlane.f32.xlu0 %v876_v54 }
 0x3ae   :  { %880 = vadd.xlane.f32.xlu1 %v879_v56  ;;  %883 = vadd.xlane.f32.xlu0 %v882_v57 }
 0x3b0   :  { %v3405_v58 = vpop.eup %3404 }
 0x3b1   :  { %v893_v59 = vmul.f32 %v3405_v58, %v4065_v16 }
 0x3b3   :  { %v901_v60 = vpack.c.bf16 %v893_v59, %v893_v59 }
 0x3b5   :  { %3140 = vmatmul.mubr.msk.bf16.vlgmr.msra.gmra.mrb[20].mxu1 %vm432_vm2, %v901_v60 }
 0x3b6   :  { %3151 = vmatprep.mubr.msk.bf16.mxu1 %vm3689_vm0, %v3688_v0 }
 0x3bf   :  { %430 = vrot.lane.b32.xlu1 %v4083_v38, %s3692_s23 }
 0x3c4   :  { %428 = vrot.lane.b32.xlu0 %v4083_v38, %s3691_s30 }
 0x3fa   :  { %v866_v61 = vpop.xlane.xlu0 %865 }
 0x3fb   :  { %3406 = vrcp.f32 %v866_v61 }
 0x3fe   :  { %v869_v62 = vpop.xlane.xlu1 %868 }
 0x3ff   :  { %3408 = vrcp.f32 %v869_v62  ;;  %v3371_v62 = vld [vmem:[%s4534_s6 + $0x30] sm:$0xff]  }
 0x402   :  { %v872_v63 = vpop.xlane.xlu0 %871  ;;  %v424_v4 = vpop.permute.xlu1 %423 }
 0x403   :  { %3410 = vrcp.f32 %v872_v63  ;;  %v1052_v16 = vsel %vm912_vm4, %v424_v4, 0 }
 0x405   :  { %v3407_v1 = vpop.eup %3406 }
 0x406   :  { %v894_v2 = vmul.f32 %v3407_v1, %v3391_v15  ;;  %v422_v3 = vpop.permute.xlu0 %421  ;;  %v427_v21 = vpop.permute.xlu1 %426 }
 0x407   :  { %v1006_v7 = vsel %vm912_vm4, %v422_v3, 0  ;;  %v1144_v24 = vsel %vm912_vm4, %v427_v21, 0 }
 0x408   :  { %3150 = vmatpush3.bf16.msra.mxu1 %v1006_v7  ;;  %v902_v8 = vpack.c.bf16 %v894_v2, %v894_v2 }
 0x409   :  { %v3409_v9 = vpop.eup %3408  ;;  %3161 = vmatprep.subr.bf16.mxu1 %v3688_v0 }
 0x40a   :  { %v895_v10 = vmul.f32 %v3409_v9, %v4070_v31  ;;  %3146 = vmatmul.mubr.msk.bf16.vlgmr.msra.gmra.mrb[24].mxu0 %vm432_vm2, %v902_v8 }
 0x40b   :  { %3156 = vmatpush3.bf16.msra.mxu0 %v1052_v16  ;;  %3157 = vmatprep.mubr.msk.bf16.mxu0 %vm3689_vm0, %v3688_v0 }
 0x40c   :  { %v903_v17 = vpack.c.bf16 %v895_v10, %v895_v10  ;;  %3167 = vmatprep.subr.bf16.mxu0 %v3688_v0  ;;  %v3372_v10 = vld [vmem:[%s4534_s6 + $0x38] sm:$0xff]   ;;  %s3694_s6 = smov 24  }
 0x40d   :  { %v3411_v18 = vpop.eup %3410 }
 0x40e   :  { %v896_v19 = vmul.f32 %v3411_v18, %v4074_v33  ;;  %3152 = vmatmul.mubr.msk.bf16.vlgmr.msra.gmra.mrb[24].mxu1 %vm432_vm2, %v903_v17 }
 0x40f   :  { %3162 = vmatpush3.bf16.msra.mxu1 %v1098_v20  ;;  %3163 = vmatprep.mubr.msk.bf16.mxu1 %vm3689_vm0, %v3688_v0 }
 0x410   :  { %v904_v22 = vpack.c.bf16 %v896_v19, %v896_v19  ;;  %3173 = vmatprep.subr.bf16.mxu1 %v3688_v0 }
 0x412   :  { %3158 = vmatmul.mubr.msk.bf16.vlgmr.msra.gmra.mrb[28].mxu0 %vm432_vm2, %v904_v22  ;;  %v162_v22 = vld [vmem:[%s4530_s2] sm:$0xff] }
 0x413   :  { %3168 = vmatpush3.bf16.msra.mxu0 %v1144_v24  ;;  %3169 = vmatprep.mubr.msk.bf16.mxu0 %vm3689_vm0, %v3688_v0 }
 0x414   :  { %3179 = vmatprep.subr.bf16.mxu0 %v3688_v0 }
 0x437   :  { %v875_v25 = vpop.xlane.xlu1 %874  ;;  %v878_v26 = vpop.xlane.xlu0 %877 }
 0x438   :  { %3412 = vrcp.f32 %v875_v25 }
 0x439   :  { %3414 = vrcp.f32 %v878_v26 }
 0x43b   :  { %v881_v27 = vpop.xlane.xlu1 %880  ;;  %v884_v15 = vpop.xlane.xlu0 %883 }
 0x43c   :  { %3416 = vrcp.f32 %v881_v27 }
 0x43d   :  { %3418 = vrcp.f32 %v884_v15 }
 0x43f   :  { %v429_v23 = vpop.permute.xlu0 %428  ;;  %v431_v33 = vpop.permute.xlu1 %430 }
 0x440   :  { %v1190_v39 = vsel %vm912_vm4, %v429_v23, 0  ;;  %v1236_v40 = vsel %vm912_vm4, %v431_v33, 0 }
 0x442   :  { %v3413_v28 = vpop.eup %3412 }
 0x443   :  { %v3415_v29 = vpop.eup %3414  ;;  %v897_v31 = vmul.f32 %v3413_v28, %v4091_v51 }
 0x444   :  { %v898_v32 = vmul.f32 %v3415_v29, %v4093_v49 }
 0x445   :  { %v905_v30 = vpack.c.bf16 %v897_v31, %v897_v31  ;;  %v163_v31 = vld [vmem:[%s4530_s2 + $0x8] sm:$0xff] }
 0x446   :  { %v3417_v34 = vpop.eup %3416  ;;  %v906_v35 = vpack.c.bf16 %v898_v32, %v898_v32 }
 0x447   :  { %v3419_v38 = vpop.eup %3418  ;;  %3164 = vmatmul.mubr.msk.bf16.vlgmr.msra.gmra.mrb[28].mxu1 %vm432_vm2, %v905_v30  ;;  %v899_v41 = vmul.f32 %v3417_v34, %v4095_v45 }
 0x448   :  { %3170 = vmatmul.mubr.msk.bf16.vlgmr.msra.gmra.mrb[32].mxu0 %vm432_vm2, %v906_v35  ;;  %3174 = vmatpush3.bf16.msra.mxu1 %v1190_v39  ;;  %v900_v42 = vmul.f32 %v3419_v38, %v4101_v55 }
 0x449   :  { %3180 = vmatpush3.bf16.msra.mxu0 %v1236_v40  ;;  %3175 = vmatprep.mubr.msk.bf16.mxu1 %vm3689_vm0, %v3688_v0  ;;  %v907_v43 = vpack.c.bf16 %v899_v41, %v899_v41 }
 0x44a   :  { %3181 = vmatprep.mubr.msk.bf16.mxu0 %vm3689_vm0, %v3688_v0  ;;  %3185 = vmatprep.subr.bf16.mxu1 %v3688_v0  ;;  %v908_v44 = vpack.c.bf16 %v900_v42, %v900_v42 }
 0x44b   :  { %3193 = vmatprep.subr.bf16.mxu0 %v3688_v0 }
 0x44f   :  { %3176 = vmatmul.mubr.msk.bf16.vlgmr.msra.gmra.mrb[32].mxu1 %vm432_vm2, %v907_v43 }
 0x450   :  { %3182 = vmatmul.mubr.msk.bf16.vlgmr.msra.gmra.mrb[36].mxu0 %vm432_vm2, %v908_v44  ;;  %3189 = vmatprep.mubr.msk.bf16.mxu1 %vm3689_vm0, %v3688_v0 }
 0x451   :  { %3197 = vmatprep.mubr.msk.bf16.mxu0 %vm3689_vm0, %v3688_v0  ;;  %3186 = vmatpush3.bf16.msra.mxu1 %v3371_v62 }
 0x452   :  { %3187 = vmatprep.subr.bf16.mxu1 %v3688_v0 }
 0x455   :  { %3188 = vmatpush3.bf16.msra.mxu1 %v3372_v10 }
 0x456   :  { %3201 = vmatprep.subr.bf16.mxu1 %v3688_v0 }
 0x488   :  { %v4155_v46 = vpop.f32.mrb[20].mxu1 }
 0x489   :  { %v3141_v47 = vpop.f32.mrb[21].mxu1  ;;  %v1278_v39 = vpack.c.bf16 %v4155_v46, %v4155_v46  ;;  %v1326_v46 = vsub.s32 3, %v3937_v11 }
 0x48a   :  { %v953_v48 = vpop.f32.mrb[22].mxu1 }
 0x48b   :  { %v3142_v50 = vpop.f32.mrb[23].mxu1 }
 0x4dd   :  { %v996_v51 = vpop.f32.mrb[24].mxu0 }
 0x4de   :  { %v1279_v53 = vpack.c.bf16 %v996_v51, %v996_v51  ;;  %v3147_v49 = vpop.f32.mrb[25].mxu0  ;;  %v1327_v51 = vrot.slane %v3942_v13, %v1326_v46 }
 0x4df   :  { %v999_v45 = vpop.f32.mrb[26].mxu0 }
 0x4e0   :  { %1287 = vrot.lane.b32.xlu0 %v1279_v53, %s3683_s24  ;;  %v3148_v52 = vpop.f32.mrb[27].mxu0 }
 0x4e1   :  { %v1042_v54 = vpop.f32.mrb[24].mxu1 }
 0x4e2   :  { %v3153_v55 = vpop.f32.mrb[25].mxu1  ;;  %v1280_v17 = vpack.c.bf16 %v1042_v54, %v1042_v54 }
 0x4e3   :  { %v1045_v56 = vpop.f32.mrb[26].mxu1 }
 0x4e4   :  { %v3154_v57 = vpop.f32.mrb[27].mxu1 }
 0x4e5   :  { %v1088_v58 = vpop.f32.mrb[28].mxu0 }
 0x4e6   :  { %v3159_v59 = vpop.f32.mrb[29].mxu0  ;;  %v1281_v29 = vpack.c.bf16 %v1088_v58, %v1088_v58 }
 0x4e7   :  { %v1091_v60 = vpop.f32.mrb[30].mxu0 }
 0x4e8   :  { %v3160_v61 = vpop.f32.mrb[31].mxu0 }
 0x51a   :  { %v1134_v63 = vpop.f32.mrb[28].mxu1 }
 0x51b   :  { %v1180_v1 = vpop.f32.mrb[32].mxu0  ;;  %v3165_v2 = vpop.f32.mrb[29].mxu1  ;;  %v1282_v30 = vpack.c.bf16 %v1134_v63, %v1134_v63 }
 0x51c   :  { %v1283_v3 = vpack.c.bf16 %v1180_v1, %v1180_v1  ;;  %v3171_v4 = vpop.f32.mrb[33].mxu0  ;;  %v1137_v7 = vpop.f32.mrb[30].mxu1 }
 0x51d   :  { %v1183_v8 = vpop.f32.mrb[34].mxu0  ;;  %v3166_v9 = vpop.f32.mrb[31].mxu1 }
 0x51e   :  { %1305 = vrot.lane.b32.xlu0 %v1283_v3, %s3683_s24  ;;  %v3172_v16 = vpop.f32.mrb[35].mxu0 }
 0x51f   :  { %v3373_v16 = vld [vmem:[#allocation13 + $0x10] sm:$0xff]  }
 0x522   :  { %1290 = vrot.lane.b32.xlu0 %v1280_v17, %s3679_s22  ;;  %v1226_v18 = vpop.f32.mrb[32].mxu1  ;;  %v3375_v17 = vld [vmem:[#allocation5] sm:$0xff]  }
 0x523   :  { %v1284_v19 = vpack.c.bf16 %v1226_v18, %v1226_v18  ;;  %v1272_v20 = vpop.f32.mrb[36].mxu0  ;;  %v3177_v21 = vpop.f32.mrb[33].mxu1  ;;  %v3376_v18 = vld [vmem:[#allocation13] sm:$0xff]  }
 0x524   :  { %v3183_v24 = vpop.f32.mrb[37].mxu0  ;;  %v1229_v25 = vpop.f32.mrb[34].mxu1  ;;  %v1285_v28 = vpack.c.bf16 %v1272_v20, %v1272_v20  ;;  %3194 = vmatpush3.bf16.msra.mxu0 %v3376_v18 }
 0x525   :  { %v1275_v26 = vpop.f32.mrb[38].mxu0  ;;  %1308 = vrot.lane.b32.xlu1 %v1284_v19, %s3679_s22  ;;  %v3178_v27 = vpop.f32.mrb[35].mxu1  ;;  %v3377_v19 = vld [vmem:[#allocation13 + $0x8] sm:$0xff]   ;;  %3195 = vmatprep.subr.bf16.mxu0 %v3688_v0 }
 0x526   :  { %v3184_v15 = vpop.f32.mrb[39].mxu0  ;;  %1385 = vperm.xlu0 %3363, %v162_v22   ;;  %v4212_v27 = vld [vmem:[#allocation14] sm:$0x7] }
 0x527   :  { %v1427_v15 = vrot.slane %v4212_v27, %v3940_v12 }
 0x528   :  { %3196 = vmatpush3.bf16.msra.mxu0 %v3377_v19 }
 0x529   :  { %1311 = vrot.lane.b32.xlu1 %v1285_v28, %s3694_s6  ;;  %3209 = vmatprep.subr.bf16.mxu0 %v3688_v0 }
 0x52d   :  { %1293 = vrot.lane.b32.xlu1 %v1281_v29, %s3694_s6  ;;  %v4219_v29 = vld [vmem:[%s4539_s11] sm:$0x7] }
 0x531   :  { %1390 = vperm.xlu1 %3364, %v163_v31  }
 0x552   :  { %v1288_v32 = vpop.permute.xlu0 %1287 }
 0x553   :  { %v1297_v42 = vsel %vm432_vm2, %v1278_v39, %v1288_v32 }
 0x590   :  { %v1306_v23 = vpop.permute.xlu0 %1305 }
 0x591   :  { %v1315_v34 = vsel %vm432_vm2, %v1282_v30, %v1306_v23  ;;  %v1433_v30 = vrot.slane %v4219_v29, %v3940_v12 }
 0x594   :  { %v1291_v40 = vpop.permute.xlu0 %1290 }
 0x595   :  { %v1300_v43 = vsel %vm1298_vm12, %v1297_v42, %v1291_v40  ;;  %v4235_v40 = vld [vmem:[%s4537_s9] sm:$0xf] }
 0x597   :  { %v1309_v33 = vpop.permute.xlu1 %1308 }
 0x598   :  { %v1317_v35 = vsel %vm1298_vm12, %v1315_v34, %v1309_v33 }
 0x59b   :  { %v1312_v38 = vpop.permute.xlu1 %1311 }
 0x59c   :  { %v1319_v41 = vsel %vm1301_vm11, %v1317_v35, %v1312_v38 }
 0x59d   :  { %v1321_v44 = vrot.slane %v1319_v41, 4  ;;  %v1517_v41 = vrot.slane %v4235_v40, %v3945_v14 }
 0x59f   :  { %v1294_v47 = vpop.permute.xlu1 %1293 }
 0x5a0   :  { %v1303_v48 = vsel %vm1301_vm11, %v1300_v43, %v1294_v47 }
 0x5a1   :  { %v1323_v50 = vsel %vm912_vm4, %v1303_v48, %v1321_v44 }
 0x5a2   :  { %3190 = vmatmul.mubr.msk.bf16.vlgmr.msra.gmra.mrb[36].mxu1 %vm226_vm1, %v1323_v50 }
 0x5a3   :  { %3205 = vmatprep.mubr.msk.bf16.mxu1 %vm3689_vm0, %v3688_v0  ;;  %3202 = vmatpush3.bf16.msra.mxu1 %v3373_v16 }
 0x5a4   :  { %3203 = vmatprep.subr.bf16.mxu1 %v3688_v0 }
 0x5a5   :  { %v4193_v49 = vpop.permute.xlu0 %1385 }
 0x5b0   :  { %v4195_v55 = vpop.permute.xlu1 %1390 }
 0x675   :  { %v1376_v53 = vpop.f32.mrb[36].mxu1 }
 0x676   :  { %v1377_v45 = vadd.f32 %v1376_v53, %v1327_v51  ;;  %v3191_v52 = vpop.f32.mrb[37].mxu1 }
 0x677   :  { %v1379_v54 = vpop.f32.mrb[38].mxu1  ;;  %v3379_v52 = vld [vmem:[#allocation13 + $0x28] sm:$0xff]  }
 0x678   :  { %v1380_v56 = vadd.f32 %v1379_v54, %v1327_v51  ;;  %v3192_v57 = vpop.f32.mrb[39].mxu1  ;;  %v1393_v58 = vmul.f32 %v4193_v49, %v1377_v45  ;;  %v3378_v45 = vld [vmem:[#allocation13 + $0x20] sm:$0xff]  }
 0x679   :  { %v1457_v57 = vrot.slane %v4235_v40, %v3940_v12 }
 0x67a   :  { %v1395_v59 = vadd.f32 %v1393_v58, %v3912_v5  ;;  %v1394_v60 = vmul.f32 %v4195_v55, %v1380_v56 }
 0x67c   :  { %v1397_v61 = vsel %vm226_vm1, %v1395_v59, 0.0  ;;  %v1396_v13 = vadd.f32 %v1394_v60, %v3914_v6  ;;  %v3374_v6 = vld [vmem:[#allocation13 + $0x18] sm:$0xff]  }
 0x67d   :  { %1398 = vadd.xlane.f32.xlu1 %v1397_v61  ;;  %3204 = vmatpush3.bf16.msra.mxu1 %v3374_v6 }
 0x67e   :  { %v1400_v62 = vsel %vm226_vm1, %v1396_v13, 0.0  ;;  %3217 = vmatprep.subr.bf16.mxu1 %v3688_v0 }
 0x67f   :  { %1401 = vadd.xlane.f32.xlu0 %v1400_v62 }
 0x680   :  { %3206 = vmatmul.mubr.msk.bf16.vlgmr.msra.gmra.mrb[40].mxu1 %vm226_vm1, %v3375_v17 }
 0x681   :  { %3219 = vmatprep.mubr.msk.bf16.mxu1 %vm3689_vm0, %v3688_v0 }
 0x70a   :  { %v1399_v63 = vpop.xlane.xlu1 %1398 }
 0x70b   :  { %v1404_v1 = vmul.f32 0.03125, %v1399_v63 }
 0x70c   :  { %v1402_v2 = vpop.xlane.xlu0 %1401 }
 0x70d   :  { %v1406_v3 = vsub.f32 %v1395_v59, %v1404_v1  ;;  %v1405_v4 = vmul.f32 0.03125, %v1402_v2 }
 0x70f   :  { %v1407_v7 = vsub.f32 %v1396_v13, %v1405_v4  ;;  %v1408_v8 = vmul.f32 %v1406_v3, %v1406_v3 }
 0x711   :  { %v1410_v9 = vsel %vm226_vm1, %v1408_v8, 0.0  ;;  %v1409_v5 = vmul.f32 %v1407_v7, %v1407_v7 }
 0x712   :  { %1411 = vadd.xlane.f32.xlu0 %v1410_v9  ;;  %v1582_v9 = vrot.slane %v4235_v40, %v3971_v37 }
 0x713   :  { %v1413_v10 = vsel %vm226_vm1, %v1409_v5, 0.0 }
 0x714   :  { %1414 = vadd.xlane.f32.xlu1 %v1413_v10 }
 0x753   :  { %v1572_v42 = vpop.f32.mrb[40].mxu1 }
 0x754   :  { %v1573_v43 = vadd.f32 %v1572_v42, %v1517_v41  ;;  %v3207_v44 = vpop.f32.mrb[41].mxu1  ;;  %v186_v42 = vld [vmem:[#allocation8] sm:$0x1] }
 0x755   :  { %v1575_v47 = vpop.f32.mrb[42].mxu1  ;;  %vm188_vm13 = vcmp.gt.f32.partialorder %v186_v42, 0.5 }
 0x756   :  { %v1576_v48 = vadd.f32 %v1575_v47, %v1517_v41  ;;  %v3208_v50 = vpop.f32.mrb[43].mxu1 }
 0x758   :  { %v1653_v51 = vpack.c.bf16 %v1576_v48, %v1573_v43  ;;  %v2051_v43 = vsel %vm188_vm13, 1, %v3693_v36 }
 0x759   :  { %v2056_v44 = vrot.slane %v2051_v43, %v3940_v12 }
 0x75a   :  { %1655 = vrot.lane.b32.xlu0 %v1653_v51, %s3690_s20  ;;  %1657 = vrot.lane.b32.xlu1 %v1653_v51, %s3691_s30  ;;  %v1687_v53 = vsel %vm432_vm2, %v1653_v51, 0 }
 0x75b   :  { %3218 = vmatpush3.bf16.xpose.msra.mxu1 %v1687_v53  ;;  %vm4307_vm14 = vcmp.eq.s32.totalorder %v2056_v44, 1 }
 0x75c   :  { %3229 = vmatprep.subr.bf16.mxu1 %v3688_v0 }
 0x75e   :  { %1659 = vrot.lane.b32.xlu0 %v1653_v51, %s3692_s23 }
 0x79f   :  { %v1412_v20 = vpop.xlane.xlu0 %1411 }
 0x7a0   :  { %v1416_v21 = vmul.f32 0.03125, %v1412_v20 }
 0x7a1   :  { %v1415_v22 = vpop.xlane.xlu1 %1414 }
 0x7a2   :  { %v1418_v24 = vadd.f32 1e-05, %v1416_v21  ;;  %v1417_v25 = vmul.f32 0.03125, %v1415_v22 }
 0x7a4   :  { %3420 = vrsqrt.f32 %v1418_v24  ;;  %v1419_v26 = vadd.f32 1e-05, %v1417_v25 }
 0x7a6   :  { %3422 = vrsqrt.f32 %v1419_v26 }
 0x7ae   :  { %v3421_v28 = vpop.eup %3420 }
 0x7af   :  { %v1422_v31 = vmul.f32 %v3421_v28, %v1406_v3 }
 0x7b0   :  { %v3423_v32 = vpop.eup %3422 }
 0x7b1   :  { %v1428_v23 = vmul.f32 %v1427_v15, %v1422_v31  ;;  %v1423_v33 = vmul.f32 %v3423_v32, %v1407_v7  ;;  %v1661_v7 = vrot.slane %v1653_v51, 4 }
 0x7b3   :  { %v1429_v34 = vmul.f32 %v1427_v15, %v1423_v33  ;;  %v4223_v35 = vadd.f32 %v1433_v30, %v1428_v23  ;;  %v1871_v26 = vsel %vm432_vm2, %v1661_v7, 0 }
 0x7b5   :  { %v4225_v38 = vadd.f32 %v1433_v30, %v1429_v34 }
 0x7b7   :  { %v1436_v39 = vpack.c.bf16 %v4225_v38, %v4223_v35 }
 0x7b9   :  { %3198 = vmatmul.mubr.msk.bf16.vlgmr.msra.gmra.mrb[40].mxu0 %vm226_vm1, %v1436_v39 }
 0x7ba   :  { %3213 = vmatprep.mubr.msk.bf16.mxu0 %vm3689_vm0, %v3688_v0  ;;  %3210 = vmatpush3.bf16.msra.mxu0 %v3378_v45 }
 0x7bb   :  { %3211 = vmatprep.subr.bf16.mxu0 %v3688_v0 }
 0x7be   :  { %3212 = vmatpush3.bf16.msra.mxu0 %v3379_v52 }
 0x7bf   :  { %3223 = vmatprep.subr.bf16.mxu0 %v3688_v0 }
 0x7c1   :  { %3214 = vmatmul.mubr.msk.bf16.vlgmr.msra.gmra.mrb[44].mxu0 %vm226_vm1, %v3375_v17 }
 0x7c2   :  { %3225 = vmatprep.mubr.msk.bf16.mxu0 %vm3689_vm0, %v3688_v0 }
 0x7cc   :  { %v1656_v54 = vpop.permute.xlu0 %1655  ;;  %v1658_v2 = vpop.permute.xlu1 %1657 }
 0x7cd   :  { %v1733_v56 = vsel %vm432_vm2, %v1656_v54, 0  ;;  %v1779_v4 = vsel %vm432_vm2, %v1658_v2, 0  ;;  %v187_v54 = vld [vmem:[#allocation8 + $0x1] sm:$0x1] }
 0x7ce   :  { %3224 = vmatpush3.bf16.xpose.msra.mxu0 %v1733_v56  ;;  %vm189_vm15 = vcmp.gt.f32.partialorder %v187_v54, 0.5 }
 0x7cf   :  { %3235 = vmatprep.subr.bf16.mxu0 %v3688_v0 }
 0x7d0   :  { %v1660_v19 = vpop.permute.xlu0 %1659 }
 0x7d1   :  { %v1825_v22 = vsel %vm432_vm2, %v1660_v19, 0 }
 0x88c   :  { %v1507_v58 = vpop.f32.mrb[40].mxu0 }
 0x88d   :  { %v1508_v59 = vadd.f32 %v1507_v58, %v1457_v57  ;;  %v3199_v60 = vpop.f32.mrb[41].mxu0 }
 0x88e   :  { %v1510_v61 = vpop.f32.mrb[42].mxu0 }
 0x88f   :  { %v1511_v13 = vadd.f32 %v1510_v61, %v1457_v57  ;;  %v3200_v62 = vpop.f32.mrb[43].mxu0  ;;  %v1636_v63 = vmul.f32 0.35355338, %v1508_v59 }
 0x891   :  { %v1637_v1 = vmul.f32 0.35355338, %v1511_v13  ;;  %v2052_v13 = vsel %vm189_vm15, 1, %v3693_v36 }
 0x893   :  { %v1638_v3 = vpack.c.bf16 %v1637_v1, %v1636_v63 }
 0x894   :  { %v1629_v5 = vpop.f32.mrb[44].mxu0 }
 0x895   :  { %1644 = vrot.lane.b32.xlu0 %v1638_v3, %s3692_s23  ;;  %1640 = vrot.lane.b32.xlu1 %v1638_v3, %s3690_s20  ;;  %v1646_v8 = vrot.slane %v1638_v3, 4  ;;  %v1630_v10 = vadd.f32 %v1629_v5, %v1582_v9  ;;  %v3215_v16 = vpop.f32.mrb[45].mxu0 }
 0x896   :  { %3220 = vmatmul.mubr.msk.bf16.vlgmr.msra.gmra.mrb[44].mxu1 %vm432_vm2, %v1638_v3  ;;  %v1632_v6 = vpop.f32.mrb[46].mxu0 }
 0x897   :  { %3230 = vmatpush3.bf16.xpose.msra.mxu1 %v1779_v4  ;;  %3231 = vmatprep.mubr.msk.bf16.mxu1 %vm3689_vm0, %v3688_v0  ;;  %v1633_v17 = vadd.f32 %v1632_v6, %v1582_v9  ;;  %v3216_v18 = vpop.f32.mrb[47].mxu0  ;;  %v2060_v4 = vrot.slane %v2052_v13, %v3940_v12 }
 0x898   :  { %3241 = vmatprep.subr.bf16.mxu1 %v3688_v0 }
 0x899   :  { %1664 = vrot.lane.b32.xlu0 %v1661_v7, %s3691_s30  ;;  %1642 = vrot.lane.b32.xlu1 %v1638_v3, %s3691_s30  ;;  %v4269_v20 = vpack.c.bf16 %v1633_v17, %v1630_v10  ;;  %vm4331_vm3 = vcmp.eq.s32.totalorder %v2060_v4, 1 }
 0x89b   :  { %v2171_v34 = vsel %vm912_vm4, %v4269_v20, 0 }
 0x89d   :  { %1666 = vrot.lane.b32.xlu0 %v1661_v7, %s3692_s23  ;;  %1662 = vrot.lane.b32.xlu1 %v1661_v7, %s3690_s20 }
 0x8a1   :  { %1651 = vrot.lane.b32.xlu0 %v1646_v8, %s3692_s23  ;;  %1647 = vrot.lane.b32.xlu1 %v1646_v8, %s3690_s20 }
 0x8a5   :  { %1649 = vrot.lane.b32.xlu1 %v1646_v8, %s3691_s30 }
 0x907   :  { %v1641_v21 = vpop.permute.xlu1 %1640  ;;  %v1645_v24 = vpop.permute.xlu0 %1644 }
 0x908   :  { %3226 = vmatmul.mubr.msk.bf16.vlgmr.msra.gmra.mrb[48].mxu0 %vm432_vm2, %v1641_v21 }
 0x909   :  { %3236 = vmatpush3.bf16.xpose.msra.mxu0 %v1825_v22  ;;  %3237 = vmatprep.mubr.msk.bf16.mxu0 %vm3689_vm0, %v3688_v0 }
 0x90a   :  { %3247 = vmatprep.subr.bf16.mxu0 %v3688_v0 }
 0x90b   :  { %v1643_v25 = vpop.permute.xlu1 %1642  ;;  %v1665_v15 = vpop.permute.xlu0 %1664 }
 0x90c   :  { %3232 = vmatmul.mubr.msk.bf16.vlgmr.msra.gmra.mrb[48].mxu1 %vm432_vm2, %v1643_v25  ;;  %v1963_v32 = vsel %vm432_vm2, %v1665_v15, 0 }
 0x90d   :  { %3242 = vmatpush3.bf16.xpose.msra.mxu1 %v1871_v26  ;;  %3243 = vmatprep.mubr.msk.bf16.mxu1 %vm3689_vm0, %v3688_v0 }
 0x90e   :  { %3253 = vmatprep.subr.bf16.mxu1 %v3688_v0 }
 0x90f   :  { %v1663_v28 = vpop.permute.xlu1 %1662  ;;  %v1667_v23 = vpop.permute.xlu0 %1666 }
 0x910   :  { %v1917_v31 = vsel %vm432_vm2, %v1663_v28, 0  ;;  %3238 = vmatmul.mubr.msk.bf16.vlgmr.msra.gmra.mrb[52].mxu0 %vm432_vm2, %v1645_v24  ;;  %v2009_v30 = vsel %vm432_vm2, %v1667_v23, 0 }
 0x911   :  { %3248 = vmatpush3.bf16.xpose.msra.mxu0 %v1917_v31  ;;  %3249 = vmatprep.mubr.msk.bf16.mxu0 %vm3689_vm0, %v3688_v0 }
 0x912   :  { %3259 = vmatprep.subr.bf16.mxu0 %v3688_v0 }
 0x913   :  { %v1648_v33 = vpop.permute.xlu1 %1647  ;;  %v1652_v41 = vpop.permute.xlu0 %1651 }
 0x914   :  { %3244 = vmatmul.mubr.msk.bf16.vlgmr.msra.gmra.mrb[52].mxu1 %vm432_vm2, %v1646_v8 }
 0x915   :  { %3254 = vmatpush3.bf16.xpose.msra.mxu1 %v1963_v32  ;;  %3255 = vmatprep.mubr.msk.bf16.mxu1 %vm3689_vm0, %v3688_v0 }
 0x916   :  { %3265 = vmatprep.subr.bf16.mxu1 %v3688_v0 }
 0x917   :  { %v1650_v39 = vpop.permute.xlu1 %1649 }
 0x918   :  { %3250 = vmatmul.mubr.msk.bf16.vlgmr.msra.gmra.mrb[56].mxu0 %vm432_vm2, %v1648_v33 }
 0x919   :  { %3260 = vmatpush3.bf16.xpose.msra.mxu0 %v2009_v30  ;;  %3261 = vmatprep.mubr.msk.bf16.mxu0 %vm3689_vm0, %v3688_v0 }
 0x91a   :  { %3271 = vmatprep.subr.bf16.mxu0 %v3688_v0 }
 0x91c   :  { %3256 = vmatmul.mubr.msk.bf16.vlgmr.msra.gmra.mrb[56].mxu1 %vm432_vm2, %v1650_v39 }
 0x91d   :  { %3266 = vmatpush3.bf16.msra.mxu1 %v2171_v34  ;;  %3267 = vmatprep.mubr.msk.bf16.mxu1 %vm3689_vm0, %v3688_v0 }
 0x91e   :  { %3277 = vmatprep.subr.bf16.mxu1 %v3688_v0 }
 0x920   :  { %3262 = vmatmul.mubr.msk.bf16.vlgmr.msra.gmra.mrb[60].mxu0 %vm432_vm2, %v1652_v41 }
 0x921   :  { %3273 = vmatprep.mubr.msk.bf16.mxu0 %vm3689_vm0, %v3688_v0 }
 0x969   :  { %v1723_v48 = vpop.f32.mrb[44].mxu1 }
 0x96a   :  { %v4313_v50 = vsel %vm4307_vm14, %v1723_v48, -1e+09  ;;  %v3221_v51 = vpop.f32.mrb[45].mxu1 }
 0x96b   :  { %v1726_v53 = vpop.f32.mrb[46].mxu1  ;;  %v2071_v45 = vsel %vm432_vm2, %v4313_v50, -inf }
 0x96c   :  { %v3222_v52 = vpop.f32.mrb[47].mxu1  ;;  %2072 = vmax.xlane.f32.xlu1 %v2071_v45 }
 0x9db   :  { %v1769_v56 = vpop.f32.mrb[48].mxu0 }
 0x9dc   :  { %v4319_v57 = vsel %vm4307_vm14, %v1769_v56, -1e+09  ;;  %v3227_v58 = vpop.f32.mrb[49].mxu0 }
 0x9dd   :  { %v1772_v59 = vpop.f32.mrb[50].mxu0  ;;  %v2074_v60 = vsel %vm432_vm2, %v4319_v57, -inf }
 0x9de   :  { %2075 = vmax.xlane.f32.xlu0 %v2074_v60  ;;  %v3228_v61 = vpop.f32.mrb[51].mxu0 }
 0x9df   :  { %v1815_v62 = vpop.f32.mrb[48].mxu1 }
 0x9e0   :  { %v2065_v63 = vsel %vm4307_vm14, %v1815_v62, -1e+09  ;;  %v3233_v1 = vpop.f32.mrb[49].mxu1 }
 0x9e1   :  { %v1818_v2 = vpop.f32.mrb[50].mxu1  ;;  %v2077_v3 = vsel %vm432_vm2, %v2065_v63, -inf }
 0x9e2   :  { %v3234_v7 = vpop.f32.mrb[51].mxu1  ;;  %2078 = vmax.xlane.f32.xlu0 %v2077_v3 }
 0x9e3   :  { %v1861_v8 = vpop.f32.mrb[52].mxu0 }
 0x9e4   :  { %v2066_v9 = vsel %vm4307_vm14, %v1861_v8, -1e+09  ;;  %v3239_v5 = vpop.f32.mrb[53].mxu0 }
 0x9e5   :  { %v1864_v10 = vpop.f32.mrb[54].mxu0  ;;  %v2080_v36 = vsel %vm432_vm2, %v2066_v9, -inf }
 0x9e6   :  { %2081 = vmax.xlane.f32.xlu1 %v2080_v36  ;;  %v3240_v6 = vpop.f32.mrb[55].mxu0 }
 0x9e7   :  { %v1907_v17 = vpop.f32.mrb[52].mxu1 }
 0x9e8   :  { %v4337_v12 = vsel %vm4331_vm3, %v1907_v17, -1e+09  ;;  %v3245_v18 = vpop.f32.mrb[53].mxu1 }
 0x9e9   :  { %v1910_v19 = vpop.f32.mrb[54].mxu1  ;;  %v2083_v21 = vsel %vm432_vm2, %v4337_v12, -inf }
 0x9ea   :  { %v3246_v22 = vpop.f32.mrb[55].mxu1  ;;  %2084 = vmax.xlane.f32.xlu0 %v2083_v21 }
 0x9eb   :  { %v1953_v24 = vpop.f32.mrb[56].mxu0 }
 0x9ec   :  { %v2068_v25 = vsel %vm4331_vm3, %v1953_v24, -1e+09  ;;  %v3251_v26 = vpop.f32.mrb[57].mxu0 }
 0x9ed   :  { %v1956_v15 = vpop.f32.mrb[58].mxu0  ;;  %v2086_v28 = vsel %vm432_vm2, %v2068_v25, -inf  ;;  %v1676_v26 = vrot.slane %v4269_v20, 4 }
 0x9ee   :  { %2087 = vmax.xlane.f32.xlu1 %v2086_v28  ;;  %v3252_v31 = vpop.f32.mrb[59].mxu0 }
 0x9ef   :  { %v1999_v32 = vpop.f32.mrb[56].mxu1 }
 0x9f0   :  { %v4346_v23 = vsel %vm4331_vm3, %v1999_v32, -1e+09  ;;  %v3257_v33 = vpop.f32.mrb[57].mxu1 }
 0x9f1   :  { %v2002_v30 = vpop.f32.mrb[58].mxu1  ;;  %v2089_v34 = vsel %vm432_vm2, %v4346_v23, -inf }
 0x9f2   :  { %v3258_v39 = vpop.f32.mrb[59].mxu1  ;;  %2090 = vmax.xlane.f32.xlu0 %v2089_v34 }
 0x9f3   :  { %v2045_v41 = vpop.f32.mrb[60].mxu0 }
 0x9f4   :  { %v2070_v42 = vsel %vm4331_vm3, %v2045_v41, -1e+09  ;;  %v3263_v43 = vpop.f32.mrb[61].mxu0 }
 0x9f5   :  { %v2048_v44 = vpop.f32.mrb[62].mxu0  ;;  %v2092_v47 = vsel %vm432_vm2, %v2070_v42, -inf }
 0x9f6   :  { %2093 = vmax.xlane.f32.xlu1 %v2092_v47  ;;  %v3264_v48 = vpop.f32.mrb[63].mxu0 }
 0x9f9   :  { %v2073_v51 = vpop.xlane.xlu1 %2072 }
 0x9fa   :  { %v2095_v53 = vsub.f32 %v4313_v50, %v2073_v51 }
 0x9fc   :  { %v2103_v45 = vmul.f32 1.442695, %v2095_v53 }
 0x9fe   :  { %3424 = vpow2.f32 %v2103_v45 }
 0xa07   :  { %1672 = vrot.lane.b32.xlu1 %v4269_v20, %s3691_s30 }
 0xa08   :  { %1670 = vrot.lane.b32.xlu0 %v4269_v20, %s3690_s20  ;;  %v3425_v52 = vpop.eup %3424 }
 0xa09   :  { %v2119_v54 = vsel %vm432_vm2, %v3425_v52, 0.0 }
 0xa0b   :  { %1674 = vrot.lane.b32.xlu1 %v4269_v20, %s3692_s23 }
 0xa27   :  { %2120 = vadd.xlane.f32.xlu0 %v2119_v54 }
 0xa6b   :  { %v2076_v56 = vpop.xlane.xlu0 %2075 }
 0xa6c   :  { %v2096_v58 = vsub.f32 %v4319_v57, %v2076_v56 }
 0xa6e   :  { %v2105_v59 = vmul.f32 1.442695, %v2096_v58 }
 0xa6f   :  { %v2079_v60 = vpop.xlane.xlu0 %2078 }
 0xa70   :  { %3426 = vpow2.f32 %v2105_v59  ;;  %v2097_v61 = vsub.f32 %v2065_v63, %v2079_v60 }
 0xa72   :  { %v2107_v13 = vmul.f32 1.442695, %v2097_v61 }
 0xa73   :  { %v2082_v62 = vpop.xlane.xlu1 %2081 }
 0xa74   :  { %3428 = vpow2.f32 %v2107_v13  ;;  %v2098_v1 = vsub.f32 %v2066_v9, %v2082_v62  ;;  %v2355_v62 = vsel %vm912_vm4, %v1676_v26, 0 }
 0xa76   :  { %v2109_v2 = vmul.f32 1.442695, %v2098_v1 }
 0xa77   :  { %v2085_v3 = vpop.xlane.xlu0 %2084 }
 0xa78   :  { %3430 = vpow2.f32 %v2109_v2  ;;  %v2099_v15 = vsub.f32 %v4337_v12, %v2085_v3 }
 0xa7a   :  { %v4362_v50 = vpop.eup %3426  ;;  %v2111_v28 = vmul.f32 1.442695, %v2099_v15 }
 0xa7b   :  { %v2088_v4 = vpop.xlane.xlu1 %2087  ;;  %v2122_v7 = vsel %vm432_vm2, %v4362_v50, 0.0 }
 0xa7c   :  { %v2100_v8 = vsub.f32 %v2068_v25, %v2088_v4  ;;  %2123 = vadd.xlane.f32.xlu1 %v2122_v7 }
 0xa7e   :  { %v3429_v57 = vpop.eup %3428  ;;  %v2113_v5 = vmul.f32 1.442695, %v2100_v8 }
 0xa7f   :  { %v2091_v10 = vpop.xlane.xlu0 %2090  ;;  %v2125_v63 = vsel %vm432_vm2, %v3429_v57, 0.0 }
 0xa80   :  { %3432 = vpow2.f32 %v2113_v5  ;;  %2126 = vadd.xlane.f32.xlu0 %v2125_v63  ;;  %v2101_v31 = vsub.f32 %v4346_v23, %v2091_v10 }
 0xa82   :  { %v4367_v36 = vpop.eup %3430  ;;  %v2115_v32 = vmul.f32 1.442695, %v2101_v31 }
 0xa83   :  { %v1671_v9 = vpop.permute.xlu0 %1670  ;;  %v2094_v16 = vpop.xlane.xlu1 %2093  ;;  %v2128_v6 = vsel %vm432_vm2, %v4367_v36, 0.0 }
 0xa84   :  { %v2217_v17 = vsel %vm912_vm4, %v1671_v9, 0  ;;  %v2102_v18 = vsub.f32 %v2070_v42, %v2094_v16  ;;  %2129 = vadd.xlane.f32.xlu1 %v2128_v6 }
 0xa85   :  { %3272 = vmatpush3.bf16.msra.mxu0 %v2217_v17 }
 0xa86   :  { %v2117_v19 = vmul.f32 1.442695, %v2102_v18  ;;  %3283 = vmatprep.subr.bf16.mxu0 %v3688_v0 }
 0xa87   :  { %v1673_v41 = vpop.permute.xlu1 %1672 }
 0xa88   :  { %3434 = vpow2.f32 %v2117_v19  ;;  %v2263_v43 = vsel %vm912_vm4, %v1673_v41, 0 }
 0xa89   :  { %3436 = vpow2.f32 %v2111_v28 }
 0xa8a   :  { %v4373_v21 = vpop.eup %3432  ;;  %3438 = vpow2.f32 %v2115_v32 }
 0xa8b   :  { %v2134_v22 = vsel %vm432_vm2, %v4373_v21, 0.0  ;;  %v1675_v44 = vpop.permute.xlu1 %1674 }
 0xa8c   :  { %2135 = vadd.xlane.f32.xlu1 %v2134_v22  ;;  %v2309_v56 = vsel %vm912_vm4, %v1675_v44, 0 }
 0xa92   :  { %v4377_v24 = vpop.eup %3434 }
 0xa93   :  { %v2140_v25 = vsel %vm432_vm2, %v4377_v24, 0.0  ;;  %v4386_v33 = vpop.eup %3436 }
 0xa94   :  { %2141 = vadd.xlane.f32.xlu1 %v2140_v25  ;;  %v2131_v34 = vsel %vm432_vm2, %v4386_v33, 0.0  ;;  %v4390_v39 = vpop.eup %3438 }
 0xa95   :  { %v2137_v20 = vsel %vm432_vm2, %v4390_v39, 0.0 }
 0xa96   :  { %1677 = vrot.lane.b32.xlu0 %v1676_v26, %s3690_s20 }
 0xaa5   :  { %1679 = vrot.lane.b32.xlu1 %v1676_v26, %s3691_s30 }
 0xab4   :  { %v2121_v30 = vpop.xlane.xlu0 %2120 }
 0xab5   :  { %3440 = vrcp.f32 %v2121_v30  ;;  %2132 = vadd.xlane.f32.xlu0 %v2131_v34 }
 0xab9   :  { %2138 = vadd.xlane.f32.xlu0 %v2137_v20 }
 0xabf   :  { %v3441_v12 = vpop.eup %3440 }
 0xac0   :  { %v2151_v23 = vmul.f32 %v3441_v12, %v3425_v52 }
 0xac2   :  { %v2159_v42 = vpack.c.bf16 %v2151_v23, %v2151_v23 }
 0xac4   :  { %3268 = vmatmul.mubr.msk.bf16.vlgmr.msra.gmra.mrb[60].mxu1 %vm432_vm2, %v2159_v42 }
 0xac5   :  { %3278 = vmatpush3.bf16.msra.mxu1 %v2263_v43  ;;  %3279 = vmatprep.mubr.msk.bf16.mxu1 %vm3689_vm0, %v3688_v0 }
 0xac6   :  { %3289 = vmatprep.subr.bf16.mxu1 %v3688_v0 }
 0xacf   :  { %1681 = vrot.lane.b32.xlu0 %v1676_v26, %s3692_s23 }
 0xb09   :  { %v2124_v47 = vpop.xlane.xlu1 %2123 }
 0xb0a   :  { %3442 = vrcp.f32 %v2124_v47 }
 0xb0d   :  { %v2127_v48 = vpop.xlane.xlu0 %2126 }
 0xb0e   :  { %3444 = vrcp.f32 %v2127_v48 }
 0xb11   :  { %v2130_v51 = vpop.xlane.xlu1 %2129  ;;  %v1678_v1 = vpop.permute.xlu0 %1677 }
 0xb12   :  { %3446 = vrcp.f32 %v2130_v51 }
 0xb14   :  { %v3443_v53 = vpop.eup %3442 }
 0xb15   :  { %v2152_v45 = vmul.f32 %v3443_v53, %v4362_v50  ;;  %v2401_v50 = vsel %vm912_vm4, %v1678_v1, 0 }
 0xb17   :  { %v2160_v52 = vpack.c.bf16 %v2152_v45, %v2152_v45 }
 0xb18   :  { %v3445_v54 = vpop.eup %3444 }
 0xb19   :  { %v2153_v58 = vmul.f32 %v3445_v54, %v3429_v57  ;;  %3274 = vmatmul.mubr.msk.bf16.vlgmr.msra.gmra.mrb[64].mxu0 %vm432_vm2, %v2160_v52  ;;  %v2136_v59 = vpop.xlane.xlu1 %2135 }
 0xb1a   :  { %3284 = vmatpush3.bf16.msra.mxu0 %v2309_v56  ;;  %3448 = vrcp.f32 %v2136_v59  ;;  %3285 = vmatprep.mubr.msk.bf16.mxu0 %vm3689_vm0, %v3688_v0  ;;  %v3380_v59 = vld [vmem:[#allocation13 + $0x30] sm:$0xff]  }
 0xb1b   :  { %v2161_v60 = vpack.c.bf16 %v2153_v58, %v2153_v58  ;;  %3295 = vmatprep.subr.bf16.mxu0 %v3688_v0 }
 0xb1c   :  { %v3447_v61 = vpop.eup %3446 }
 0xb1d   :  { %v2154_v13 = vmul.f32 %v3447_v61, %v4367_v36  ;;  %3280 = vmatmul.mubr.msk.bf16.vlgmr.msra.gmra.mrb[64].mxu1 %vm432_vm2, %v2161_v60 }
 0xb1e   :  { %3290 = vmatpush3.bf16.msra.mxu1 %v2355_v62  ;;  %3291 = vmatprep.mubr.msk.bf16.mxu1 %vm3689_vm0, %v3688_v0 }
 0xb1f   :  { %v2162_v2 = vpack.c.bf16 %v2154_v13, %v2154_v13  ;;  %3301 = vmatprep.subr.bf16.mxu1 %v3688_v0 }
 0xb21   :  { %3286 = vmatmul.mubr.msk.bf16.vlgmr.msra.gmra.mrb[68].mxu0 %vm432_vm2, %v2162_v2  ;;  %v2142_v8 = vpop.xlane.xlu1 %2141 }
 0xb22   :  { %3296 = vmatpush3.bf16.msra.mxu0 %v2401_v50  ;;  %3297 = vmatprep.mubr.msk.bf16.mxu0 %vm3689_vm0, %v3688_v0  ;;  %3450 = vrcp.f32 %v2142_v8  ;;  %v3381_v50 = vld [vmem:[#allocation13 + $0x38] sm:$0xff]  }
 0xb23   :  { %3307 = vmatprep.subr.bf16.mxu0 %v3688_v0 }
 0xb24   :  { %v3449_v3 = vpop.eup %3448 }
 0xb25   :  { %v2156_v4 = vmul.f32 %v3449_v3, %v4373_v21  ;;  %v1680_v18 = vpop.permute.xlu1 %1679 }
 0xb26   :  { %v2447_v22 = vsel %vm912_vm4, %v1680_v18, 0 }
 0xb27   :  { %v2164_v7 = vpack.c.bf16 %v2156_v4, %v2156_v4 }
 0xb29   :  { %3298 = vmatmul.mubr.msk.bf16.vlgmr.msra.gmra.mrb[72].mxu0 %vm432_vm2, %v2164_v7 }
 0xb2a   :  { %3309 = vmatprep.mubr.msk.bf16.mxu0 %vm3689_vm0, %v3688_v0 }
 0xb2c   :  { %v3451_v5 = vpop.eup %3450 }
 0xb2d   :  { %v2158_v63 = vmul.f32 %v3451_v5, %v4377_v24 }
 0xb2f   :  { %v2166_v6 = vpack.c.bf16 %v2158_v63, %v2158_v63 }
 0xb42   :  { %v2133_v57 = vpop.xlane.xlu0 %2132 }
 0xb43   :  { %3452 = vrcp.f32 %v2133_v57 }
 0xb46   :  { %v2139_v10 = vpop.xlane.xlu0 %2138 }
 0xb47   :  { %3454 = vrcp.f32 %v2139_v10 }
 0xb4a   :  { %v1682_v36 = vpop.permute.xlu0 %1681 }
 0xb4b   :  { %v2493_v9 = vsel %vm912_vm4, %v1682_v36, 0 }
 0xb4c   :  { %3308 = vmatpush3.bf16.msra.mxu0 %v2493_v9 }
 0xb4d   :  { %v3453_v16 = vpop.eup %3452  ;;  %3321 = vmatprep.subr.bf16.mxu0 %v3688_v0 }
 0xb4e   :  { %v2155_v17 = vmul.f32 %v3453_v16, %v4386_v33 }
 0xb4f   :  { %3310 = vmatmul.mubr.msk.bf16.vlgmr.msra.gmra.mrb[76].mxu0 %vm432_vm2, %v2166_v6 }
 0xb50   :  { %v2163_v19 = vpack.c.bf16 %v2155_v17, %v2155_v17  ;;  %3325 = vmatprep.mubr.msk.bf16.mxu0 %vm3689_vm0, %v3688_v0 }
 0xb51   :  { %v3455_v21 = vpop.eup %3454 }
 0xb52   :  { %3292 = vmatmul.mubr.msk.bf16.vlgmr.msra.gmra.mrb[68].mxu1 %vm432_vm2, %v2163_v19  ;;  %v2157_v24 = vmul.f32 %v3455_v21, %v4390_v39 }
 0xb53   :  { %3302 = vmatpush3.bf16.msra.mxu1 %v2447_v22  ;;  %3303 = vmatprep.mubr.msk.bf16.mxu1 %vm3689_vm0, %v3688_v0 }
 0xb54   :  { %3313 = vmatprep.subr.bf16.mxu1 %v3688_v0  ;;  %v2165_v25 = vpack.c.bf16 %v2157_v24, %v2157_v24 }
 0xb5a   :  { %3304 = vmatmul.mubr.msk.bf16.vlgmr.msra.gmra.mrb[72].mxu1 %vm432_vm2, %v2165_v25 }
 0xb5b   :  { %3317 = vmatprep.mubr.msk.bf16.mxu1 %vm3689_vm0, %v3688_v0  ;;  %3314 = vmatpush3.bf16.msra.mxu1 %v3380_v59  ;;  %v3385_v59 = vld [vmem:[%s4542_s14 + $0x8] sm:$0xff]  }
 0xb5c   :  { %3315 = vmatprep.subr.bf16.mxu1 %v3688_v0 }
 0xb5f   :  { %3316 = vmatpush3.bf16.msra.mxu1 %v3381_v50  ;;  %v2671_v50 = vrot.slane %v4212_v27, %v3945_v14 }
 0xb60   :  { %3329 = vmatprep.subr.bf16.mxu1 %v3688_v0 }
 0xb97   :  { %v2207_v26 = vpop.f32.mrb[60].mxu1 }
 0xb98   :  { %v3269_v15 = vpop.f32.mrb[61].mxu1  ;;  %v2535_v19 = vpack.c.bf16 %v2207_v26, %v2207_v26  ;;  %v2582_v26 = vrot.slane %v4235_v40, %v1326_v46 }
 0xb99   :  { %v2210_v28 = vpop.f32.mrb[62].mxu1 }
 0xb9a   :  { %v3270_v31 = vpop.f32.mrb[63].mxu1 }
 0xbec   :  { %v2253_v32 = vpop.f32.mrb[64].mxu0 }
 0xbed   :  { %v2536_v33 = vpack.c.bf16 %v2253_v32, %v2253_v32  ;;  %v3275_v30 = vpop.f32.mrb[65].mxu0 }
 0xbee   :  { %v2256_v34 = vpop.f32.mrb[66].mxu0 }
 0xbef   :  { %2544 = vrot.lane.b32.xlu1 %v2536_v33, %s3683_s24  ;;  %v3276_v20 = vpop.f32.mrb[67].mxu0 }
 0xbf0   :  { %v2299_v39 = vpop.f32.mrb[64].mxu1 }
 0xbf1   :  { %v3281_v12 = vpop.f32.mrb[65].mxu1  ;;  %v2537_v54 = vpack.c.bf16 %v2299_v39, %v2299_v39 }
 0xbf2   :  { %v2302_v23 = vpop.f32.mrb[66].mxu1 }
 0xbf3   :  { %v3282_v41 = vpop.f32.mrb[67].mxu1 }
 0xbf4   :  { %v2345_v42 = vpop.f32.mrb[68].mxu0 }
 0xbf5   :  { %v3287_v43 = vpop.f32.mrb[69].mxu0  ;;  %v2538_v10 = vpack.c.bf16 %v2345_v42, %v2345_v42 }
 0xbf6   :  { %v2348_v44 = vpop.f32.mrb[70].mxu0 }
 0xbf7   :  { %v3288_v47 = vpop.f32.mrb[71].mxu0 }
 0xbfc   :  { %v2437_v48 = vpop.f32.mrb[72].mxu0 }
 0xbfd   :  { %v2540_v51 = vpack.c.bf16 %v2437_v48, %v2437_v48  ;;  %v3299_v53 = vpop.f32.mrb[73].mxu0 }
 0xbfe   :  { %v2440_v45 = vpop.f32.mrb[74].mxu0 }
 0xbff   :  { %2560 = vrot.lane.b32.xlu1 %v2540_v51, %s3683_s24  ;;  %v3300_v52 = vpop.f32.mrb[75].mxu0 }
 0xc03   :  { %2547 = vrot.lane.b32.xlu1 %v2537_v54, %s3679_s22 }
 0xc22   :  { %v2529_v56 = vpop.f32.mrb[76].mxu0 }
 0xc23   :  { %v3311_v58 = vpop.f32.mrb[77].mxu0  ;;  %v2542_v5 = vpack.c.bf16 %v2529_v56, %v2529_v56  ;;  %v3383_v56 = vld [vmem:[%s4540_s12 + $0x8] sm:$0xff]  }
 0xc24   :  { %v2532_v60 = vpop.f32.mrb[78].mxu0  ;;  %v3384_v58 = vld [vmem:[%s4542_s14] sm:$0xff]  }
 0xc25   :  { %v2391_v61 = vpop.f32.mrb[68].mxu1  ;;  %v3312_v13 = vpop.f32.mrb[79].mxu0 }
 0xc26   :  { %v3293_v62 = vpop.f32.mrb[69].mxu1  ;;  %v2539_v16 = vpack.c.bf16 %v2391_v61, %v2391_v61 }
 0xc27   :  { %v2394_v1 = vpop.f32.mrb[70].mxu1 }
 0xc28   :  { %v3294_v2 = vpop.f32.mrb[71].mxu1 }
 0xc2d   :  { %v2483_v3 = vpop.f32.mrb[72].mxu1 }
 0xc2e   :  { %v2541_v4 = vpack.c.bf16 %v2483_v3, %v2483_v3  ;;  %v3305_v7 = vpop.f32.mrb[73].mxu1 }
 0xc2f   :  { %v2486_v8 = vpop.f32.mrb[74].mxu1 }
 0xc30   :  { %2563 = vrot.lane.b32.xlu0 %v2541_v4, %s3679_s22  ;;  %v3306_v57 = vpop.f32.mrb[75].mxu1 }
 0xc34   :  { %2566 = vrot.lane.b32.xlu0 %v2542_v5, %s3694_s6  ;;  %v2677_v5 = vrot.slane %v4219_v29, %v3945_v14  ;;  %v2959_v14 = vld [vmem:[%s4541_s13] ss:$0 sm:$0xff]  ;;  %s3695_s13 = smov [#allocation16]  }
 0xc38   :  { %2550 = vrot.lane.b32.xlu0 %v2538_v10, %s3694_s6 }
 0xc61   :  { %v2545_v63 = vpop.permute.xlu1 %2544 }
 0xc62   :  { %v2554_v24 = vsel %vm432_vm2, %v2535_v19, %v2545_v63 }
 0xc71   :  { %v2561_v36 = vpop.permute.xlu1 %2560 }
 0xc72   :  { %v2570_v6 = vsel %vm432_vm2, %v2539_v16, %v2561_v36  ;;  %v3386_v16 = vld [vmem:[%s4542_s14 + $0x10] sm:$0xff]  }
 0xc75   :  { %v2548_v21 = vpop.permute.xlu1 %2547 }
 0xc76   :  { %v2556_v25 = vsel %vm1298_vm12, %v2554_v24, %v2548_v21 }
 0xca2   :  { %v2564_v9 = vpop.permute.xlu0 %2563 }
 0xca3   :  { %v2572_v17 = vsel %vm1298_vm12, %v2570_v6, %v2564_v9  ;;  %v3387_v6 = vld [vmem:[%s4542_s14 + $0x18] sm:$0xff]   ;;  %s2886_s14 = sshll.u32 %s3695_s13, 4  ;;  %s2887_s14 = int_to_ptr.vmem [resolvable:$true] %s2886_s14 }
 0xca4   :  { %p3645_p9 = scmp.lt.s32.totalorder %s2887_s14, %s2887_s14 }
 0xca6   :  { %v2567_v18 = vpop.permute.xlu0 %2566 }
 0xca7   :  { %v2574_v22 = vsel %vm1301_vm11, %v2572_v17, %v2567_v18 }
 0xca8   :  { %v2576_v15 = vrot.slane %v2574_v22, 4 }
 0xcaa   :  { %v2551_v28 = vpop.permute.xlu0 %2550 }
 0xcab   :  { %v2558_v31 = vsel %vm1301_vm11, %v2556_v25, %v2551_v28 }
 0xcac   :  { %v2578_v32 = vsel %vm912_vm4, %v2558_v31, %v2576_v15 }
 0xcad   :  { %3318 = vmatmul.mubr.msk.bf16.vlgmr.msra.gmra.mrb[76].mxu1 %vm226_vm1, %v2578_v32 }
 0xcae   :  { %3337 = vmatprep.mubr.msk.bf16.mxu1 %vm3689_vm0, %v3688_v0  ;;  %3330 = vmatpush3.bf16.msra.mxu1 %v3384_v58  ;;  %vm2790_vm0 = vcmask 523264  }
 0xcaf   :  { %3331 = vmatprep.subr.bf16.mxu1 %v3688_v0 }
 0xcb2   :  { %3332 = vmatpush3.bf16.msra.mxu1 %v3385_v59  ;;  %v2868_v59 = vrot.slane %v4212_v27, %v3971_v37 }
 0xcb3   :  { %3333 = vmatprep.subr.bf16.mxu1 %v3688_v0 }
 0xcb6   :  { %3334 = vmatpush3.bf16.msra.mxu1 %v3386_v16 }
 0xcb7   :  { %3335 = vmatprep.subr.bf16.mxu1 %v3688_v0 }
 0xcba   :  { %3336 = vmatpush3.bf16.msra.mxu1 %v3387_v6 }
 0xd80   :  { %v2631_v33 = vpop.f32.mrb[76].mxu1 }
 0xd81   :  { %v2632_v30 = vadd.f32 %v2631_v33, %v2582_v26  ;;  %v3319_v34 = vpop.f32.mrb[77].mxu1 }
 0xd82   :  { %v2634_v20 = vpop.f32.mrb[78].mxu1 }
 0xd83   :  { %v2638_v39 = vmul.f32 %v2632_v30, %v4193_v49  ;;  %v2635_v12 = vadd.f32 %v2634_v20, %v2582_v26  ;;  %v3320_v23 = vpop.f32.mrb[79].mxu1 }
 0xd85   :  { %v2639_v41 = vmul.f32 %v2635_v12, %v4195_v55  ;;  %v2640_v42 = vadd.f32 %v2638_v39, %v4223_v35 }
 0xd87   :  { %v2642_v43 = vsel %vm226_vm1, %v2640_v42, 0.0  ;;  %v2641_v44 = vadd.f32 %v2639_v41, %v4225_v38  ;;  %v3382_v38 = vld [vmem:[%s4540_s12] sm:$0xff]  }
 0xd88   :  { %2643 = vadd.xlane.f32.xlu1 %v2642_v43  ;;  %3322 = vmatpush3.bf16.msra.mxu0 %v3382_v38 }
 0xd89   :  { %v2645_v11 = vsel %vm226_vm1, %v2641_v44, 0.0  ;;  %3323 = vmatprep.subr.bf16.mxu0 %v3688_v0  ;;  %v2963_v0 = vld [vmem:[%s4543_s15] ss:$0 sm:$0xff]  ;;  %s3640_s15 = scalar_lea.vmem %s2887_s14, 256 }
 0xd8a   :  { %2646 = vadd.xlane.f32.xlu0 %v2645_v11  ;;  %p3641_p8 = scmp.ne.s32.totalorder %s2887_s14, %s3640_s15  ;;  %p3646_p10 = scmp.lt.s32.totalorder %s3640_s15, %s3640_s15 }
 0xd8c   :  { %3324 = vmatpush3.bf16.msra.mxu0 %v3383_v56  ;;  %p3647_p11 = por %p3646_p10, %p3645_p9 }
 0xd8e   :  { %p3648_p12 = pnand %p3647_p11, %p3641_p8 }
 0xe15   :  { %v2644_v46 = vpop.xlane.xlu1 %2643 }
 0xe16   :  { %v2648_v40 = vmul.f32 0.03125, %v2644_v46 }
 0xe17   :  { %v2647_v47 = vpop.xlane.xlu0 %2646 }
 0xe18   :  { %v2650_v48 = vsub.f32 %v2640_v42, %v2648_v40  ;;  %v2649_v51 = vmul.f32 0.03125, %v2647_v47 }
 0xe1a   :  { %v2651_v53 = vsub.f32 %v2641_v44, %v2649_v51  ;;  %v2652_v45 = vmul.f32 %v2650_v48, %v2650_v48 }
 0xe1c   :  { %v2654_v52 = vsel %vm226_vm1, %v2652_v45, 0.0  ;;  %v2653_v54 = vmul.f32 %v2651_v53, %v2651_v53 }
 0xe1d   :  { %2655 = vadd.xlane.f32.xlu0 %v2654_v52 }
 0xe1e   :  { %v2657_v35 = vsel %vm226_vm1, %v2653_v54, 0.0 }
 0xe1f   :  { %2658 = vadd.xlane.f32.xlu1 %v2657_v35 }
 0xeaa   :  { %v2656_v60 = vpop.xlane.xlu0 %2655 }
 0xeab   :  { %v2660_v61 = vmul.f32 0.03125, %v2656_v60 }
 0xeac   :  { %v2659_v13 = vpop.xlane.xlu1 %2658 }
 0xead   :  { %v2662_v62 = vadd.f32 1e-05, %v2660_v61  ;;  %v2661_v1 = vmul.f32 0.03125, %v2659_v13  ;;  %v2874_v13 = vrot.slane %v4219_v29, %v3971_v37 }
 0xeaf   :  { %3456 = vrsqrt.f32 %v2662_v62  ;;  %v2663_v2 = vadd.f32 1e-05, %v2661_v1 }
 0xeb1   :  { %3458 = vrsqrt.f32 %v2663_v2 }
 0xeb9   :  { %v3457_v3 = vpop.eup %3456 }
 0xeba   :  { %v2666_v4 = vmul.f32 %v3457_v3, %v2650_v48 }
 0xebb   :  { %v3459_v7 = vpop.eup %3458 }
 0xebc   :  { %v2672_v8 = vmul.f32 %v2671_v50, %v2666_v4  ;;  %v2667_v57 = vmul.f32 %v3459_v7, %v2651_v53 }
 0xebe   :  { %v2673_v10 = vmul.f32 %v2671_v50, %v2667_v57  ;;  %v2678_v63 = vadd.f32 %v2677_v5, %v2672_v8 }
 0xec0   :  { %v2679_v36 = vadd.f32 %v2677_v5, %v2673_v10 }
 0xec2   :  { %v2680_v9 = vpack.c.bf16 %v2679_v36, %v2678_v63 }
 0xec4   :  { %3326 = vmatmul.mubr.msk.bf16.vlgmr.msra.gmra.mrb[80].mxu0 %vm226_vm1, %v2680_v9 }
 0xf97   :  { %v2741_v17 = vpop.f32.mrb[80].mxu0 }
 0xf98   :  { %v2742_v18 = vadd.f32 %v2959_v14, %v2741_v17  ;;  %v3327_v19 = vpop.f32.mrb[81].mxu0 }
 0xf99   :  { %v2744_v21 = vpop.f32.mrb[82].mxu0 }
 0xf9a   :  { %v2745_v22 = vadd.f32 %v2959_v14, %v2744_v21  ;;  %v3328_v24 = vpop.f32.mrb[83].mxu0  ;;  %v2748_v25 = vmax.f32 %v2742_v18, 0.0 }
 0xf9c   :  { %v2749_v15 = vmax.f32 %v2745_v22, 0.0 }
 0xf9e   :  { %v2750_v28 = vpack.c.bf16 %v2749_v15, %v2748_v25 }
 0xfa0   :  { %3338 = vmatmul.mubr.msk.bf16.vlgmr.msra.gmra.mrb[80].mxu1 %vm2790_vm0, %v2750_v28 }
0x1073   :  { %v2828_v31 = vpop.f32.mrb[80].mxu1 }
0x1074   :  { %v2829_v32 = vadd.f32 %v2963_v0, %v2828_v31  ;;  %v3339_v26 = vpop.f32.mrb[81].mxu1 }
0x1075   :  { %v2831_v33 = vpop.f32.mrb[82].mxu1 }
0x1076   :  { %v2835_v30 = vmul.f32 %v2829_v32, %v4193_v49  ;;  %v2832_v34 = vadd.f32 %v2963_v0, %v2831_v33  ;;  %v3340_v20 = vpop.f32.mrb[83].mxu1 }
0x1078   :  { %v2836_v39 = vmul.f32 %v2832_v34, %v4195_v55  ;;  %v2837_v12 = vadd.f32 %v2835_v30, %v2678_v63 }
0x107a   :  { %v2839_v23 = vsel %vm226_vm1, %v2837_v12, 0.0  ;;  %v2838_v41 = vadd.f32 %v2836_v39, %v2679_v36 }
0x107b   :  { %2840 = vadd.xlane.f32.xlu0 %v2839_v23 }
0x107c   :  { %v2842_v42 = vsel %vm226_vm1, %v2838_v41, 0.0 }
0x107d   :  { %2843 = vadd.xlane.f32.xlu1 %v2842_v42 }
0x1108   :  { %v2841_v43 = vpop.xlane.xlu0 %2840 }
0x1109   :  { %v2845_v44 = vmul.f32 0.03125, %v2841_v43 }
0x110a   :  { %v2844_v11 = vpop.xlane.xlu1 %2843 }
0x110b   :  { %v2847_v46 = vsub.f32 %v2837_v12, %v2845_v44  ;;  %v2846_v40 = vmul.f32 0.03125, %v2844_v11 }
0x110d   :  { %v2848_v47 = vsub.f32 %v2838_v41, %v2846_v40  ;;  %v2849_v48 = vmul.f32 %v2847_v46, %v2847_v46 }
0x110f   :  { %v2851_v51 = vsel %vm226_vm1, %v2849_v48, 0.0  ;;  %v2850_v53 = vmul.f32 %v2848_v47, %v2848_v47 }
0x1110   :  { %2852 = vadd.xlane.f32.xlu0 %v2851_v51 }
0x1111   :  { %v2854_v45 = vsel %vm226_vm1, %v2850_v53, 0.0 }
0x1112   :  { %2855 = vadd.xlane.f32.xlu1 %v2854_v45 }
0x119d   :  { %v2853_v52 = vpop.xlane.xlu0 %2852 }
0x119e   :  { %v2857_v54 = vmul.f32 0.03125, %v2853_v52 }
0x119f   :  { %v2856_v35 = vpop.xlane.xlu1 %2855 }
0x11a0   :  { %v2859_v38 = vadd.f32 1e-05, %v2857_v54  ;;  %v2858_v56 = vmul.f32 0.03125, %v2856_v35 }
0x11a2   :  { %3460 = vrsqrt.f32 %v2859_v38  ;;  %v2860_v58 = vadd.f32 1e-05, %v2858_v56 }
0x11a4   :  { %3462 = vrsqrt.f32 %v2860_v58 }
0x11ac   :  { %v3461_v60 = vpop.eup %3460 }
0x11ad   :  { %v2863_v61 = vmul.f32 %v3461_v60, %v2847_v46 }
0x11ae   :  { %v3463_v62 = vpop.eup %3462 }
0x11af   :  { %v2864_v1 = vmul.f32 %v3463_v62, %v2848_v47  ;;  %v2869_v2 = vmul.f32 %v2868_v59, %v2863_v61 }
0x11b1   :  { %v2870_v50 = vmul.f32 %v2868_v59, %v2864_v1  ;;  %v2875_v3 = vadd.f32 %v2874_v13, %v2869_v2 }
0x11b3   :  { %v2876_v4 = vadd.f32 %v2874_v13, %v2870_v50  ;;  %v2877_v7 = vmul.f32 %v2875_v3, %v4193_v49 }
0x11b5   :  { %v2878_v8 = vmul.f32 %v2876_v4, %v4195_v55  ;;  %2879 = vst.msk [vmem:[#allocation16] sm:$0xff] %vm226_vm1, %v2877_v7 }
0x11b7   :  { %2880 = vst.msk [vmem:[#allocation16 + $0x8] sm:$0xff] %vm226_vm1, %v2878_v8 }
0x11b8   :  { %3651 = shalt.err (!%p3648_p12)
}
0x11b9   :  { %s4562_s10 = sld [smem:[#allocation24_spill]] }
0x11bf   :  { %s3652_s6 = scalar_lea.hbm %s4562_s10, 256 }
0x11c0   :  { %p3653_p13 = scmp.ne.s32.totalorder %s4562_s10, %s3652_s6  ;;  %p3656_p0 = scmp.lt.u32.totalorder %s3652_s6, %s4562_s10 }
0x11c2   :  { %p3658_p1 = pnand %p3656_p0, %p3653_p13 }
0x11c4   :  { %3661 = shalt.err (!%p3658_p1)
}
0x11c5   :  { %2892 = dma.vmem_to_hbm [thread:$0]  %s2887_s14, 256, %s4562_s10, [#allocation4], %s3682_s7, %s3682_s7, %s3683_s24  }
0x11c6   :  { %3672 = dma.done.wait [#allocation4], 256  }
0x11c7   :  { %3673 = vsyncadd [#allocation4], 4294967040 }
0x11c8   :  { %2896 = vsyncpa [#allocation3], 1 }
0x11c9   :  { %2897 = vsyncpa [#allocation6], 1 }
0x11ca   :  { %2898 = vsyncpa [#allocation9], 1 }
0x11cb   :  { %2899 = vsyncpa [#allocation12], 1 }
0x11cc   :  { %2900 = vsyncpa [#allocation15], 1 }
0x11cd   :  { %2901 = vsyncpa [#allocation4], 1 }

</bundles_post_ra>
